<compile_context>
chip_gen: v7x
topology: tpu7x:2x2x1
jax: 0.10.0
libtpu: 0.0.40
codegen_flags: <defaults>
</compile_context>

<pallas_src>
import jax
import jax.numpy as jnp
import numpy as np
from jax.experimental import pallas as pl
from jax.experimental.pallas import tpu as pltpu


CONFIG = {
    "model": {
        "loss": {
            "fine_correct_thr": 1.0,
            "pos_weight": 1.0,
            "neg_weight": 1.0,       # present in config; unused by this loss path (matches reference)
            "fine_type": "l2_with_std",
            "focal_alpha": 0.25,
            "coarse_weight": 1.0,
            "fine_weight": 1.0,
        }
    }
}


# ----------------------------------------------------------------------------
# Pallas kernel: sampled-negative topic term (the only dense work left)
# ----------------------------------------------------------------------------
def _coarse_neg_kernel(topic_ref, neg_ref, m0_ref, m1_ref, out_ref,
                       acc_nt_ref, acc_cn_ref):
    """Negative-topic-loss partials for one (batch, HW0-tile, HW1-tile) block.

    acc_nt_ref / acc_cn_ref : (8, t1) f32 VMEM accumulators (carried over the j axis):
        acc_nt = sublane-folded sum of  neg * w * log(1 - topic + 1e-6)
        acc_cn = sublane-folded sum of  neg                (negative count)
    out block (1, 1, 16, t1): rows 0:8 = acc_nt, rows 8:16 = acc_cn for this (b, i)
    slice.  (-alpha) and the final lane/sublane reductions are applied in glue.
    """
    j = pl.program_id(2)
    nj = pl.num_programs(2)

    @pl.when(j == 0)
    def _init():
        acc_nt_ref[...] = jnp.zeros_like(acc_nt_ref)
        acc_cn_ref[...] = jnp.zeros_like(acc_cn_ref)

    # coarse weight: outer product of the factored masks, formed on the VPU,
    # never materialized in HBM.
    w = m0_ref[0] * m1_ref[0]                         # (t0,1)*(1,t1) -> (t0,t1)
    neg = neg_ref[0].astype(jnp.float32)              # int8 -> f32
    topic = topic_ref[0].astype(jnp.float32)          # bf16/f32 -> f32 (v5e: no bf16 VPU/EUP)

    t0, t1 = neg.shape
    x = (neg * w) * jnp.log((1.0 - topic) + 1e-6)     # (t0,t1)

    # Fold sublane groups with full-vreg VPU adds; the 8->1 sublane and lane
    # reductions happen once, outside the kernel (no per-step masked RMW / XLU).
    acc_nt_ref[...] += jnp.sum(x.reshape(t0 // 8, 8, t1), axis=0)
    acc_cn_ref[...] += jnp.sum(neg.reshape(t0 // 8, 8, t1), axis=0)

    @pl.when(j == nj - 1)
    def _finalize():
        out_ref[0, 0, 0:8, :] = acc_nt_ref[...]
        out_ref[0, 0, 8:16, :] = acc_cn_ref[...]


def coarse_neg_partial_sums(topic_s, neg_i8, m0, m1, t0, t1, vmem_limit):
    """Runs the dense negative-term kernel.  Returns (N, ni, 16, t1) f32 partials."""
    N, HW0p, HW1p = topic_s.shape
    ni, nj = HW0p // t0, HW1p // t1

    def tile():
        return pl.BlockSpec((1, t0, t1), lambda b, i, j: (b, i, j))

    return pl.pallas_call(
        _coarse_neg_kernel,
        out_shape=jax.ShapeDtypeStruct((N, ni, 16, t1), jnp.float32),
        grid=(N, ni, nj),
        in_specs=[
            tile(),                                                   # topic   bf16/f32
            tile(),                                                   # neg     int8
            pl.BlockSpec((1, t0, 1), lambda b, i, j: (b, i, 0)),      # mask0 column
            pl.BlockSpec((1, 1, t1), lambda b, i, j: (b, 0, j)),      # mask1 row
        ],
        out_specs=pl.BlockSpec((1, 1, 16, t1), lambda b, i, j: (b, i, 0, 0)),
        scratch_shapes=[pltpu.VMEM((8, t1), jnp.float32),
                        pltpu.VMEM((8, t1), jnp.float32)],
        compiler_params=pltpu.CompilerParams(
            dimension_semantics=("parallel", "parallel", "arbitrary"),
            vmem_limit_bytes=vmem_limit,
        ),
    )(topic_s, neg_i8, m0, m1)


# ----------------------------------------------------------------------------
# Tiling helpers (generation-aware, never fall back to an un-tiled full dim)
# ----------------------------------------------------------------------------
def _round_up(x, m):
    return ((x + m - 1) // m) * m


def _pick_tile(dim, target, quantum):
    """Return (tile, padded_dim).  Prefers an exact divisor tile in [target/2, target]
    (no pad copy); otherwise pads `dim` up to a multiple of a target-sized tile
    (pads are zero-filled in glue, keeping all sums exact)."""
    if dim <= target:
        t = _round_up(dim, quantum)
        return t, t
    t = (target // quantum) * quantum
    lo = max(quantum, t // 2)
    cand = t
    while cand >= lo:
        if dim % cand == 0:
            return cand, dim
        cand -= quantum
    return t, _round_up(dim, t)


def _hw_budget():
    """(t0_target, t1_target, vmem_limit_bytes) sized to the local TPU generation."""
    vmem = 64 * 1024 * 1024                       # conservative default (v7x physical VMEM)
    try:
        info = pltpu.get_tpu_info()
        vmem = int(getattr(info, "vmem_capacity_bytes", vmem))
    except Exception:
        pass
    if vmem >= 96 * 1024 * 1024:                  # v5e / v6e: 128 MiB VMEM
        return 256, 4096, 64 * 1024 * 1024
    return 256, 2048, 40 * 1024 * 1024            # v7x: 64 MiB VMEM, leave headroom


# ----------------------------------------------------------------------------
# Glue: negative sampling, sparse positive terms, fine loss, loss assembly
# ----------------------------------------------------------------------------
def sample_non_matches_neg_mask(key, conf_gt, match_ids, sampling_ratio=10):
    """JAX port of sample_non_matches (torch.multinomial over uniform probs ==
    uniform integer sampling).  Returns an int8 mask via a single scatter."""
    b_ids, i_ids, j_ids = match_ids
    N, HW0, HW1 = conf_gt.shape
    if j_ids.shape[0] == 0:
        return (conf_gt != 1.0).astype(jnp.int8)       # ~pos_mask
    n = j_ids.shape[0]
    HW = HW0                                           # mirrors reference: pos_mask.shape[1]
    num_d = (HW - 1) // 3
    d = jax.random.randint(key, (sampling_ratio, n), 0, num_d)
    sampled_j = (j_ids[None, :].astype(jnp.int32) + d * 3 + 1) % HW
    bb = jnp.broadcast_to(b_ids[None, :], (sampling_ratio, n)).reshape(-1)
    ii = jnp.broadcast_to(i_ids[None, :], (sampling_ratio, n)).reshape(-1)
    jj = sampled_j.reshape(-1)
    return jnp.zeros((N, HW0, HW1), jnp.int8).at[bb, ii, jj].set(1)


def _sparse_positive_terms(topic, conf, m0_flat, m1_flat, match_ids):
    """Positive-set coarse-loss terms as sparse gathers (n_matches entries).
    Duplicate (b,i,j) triplets are counted once (matches `conf_gt == 1` semantics).
    Returns (sum_w_log_topic, sum_w_log_conf, pos_count)."""
    b_ids, i_ids, j_ids = match_ids
    if b_ids.shape[0] == 0:
        z = jnp.float32(0.0)
        return z, z, z
    _, HW0, HW1 = topic.shape
    b = b_ids.astype(jnp.int32)
    i = i_ids.astype(jnp.int32)
    j = j_ids.astype(jnp.int32)
    flat = (b * HW0 + i) * HW1 + j
    order = jnp.argsort(flat)
    b, i, j, flat = b[order], i[order], j[order], flat[order]
    first = jnp.concatenate(
        [jnp.ones((1,), jnp.float32), (flat[1:] != flat[:-1]).astype(jnp.float32)])
    w = m0_flat[b, i] * m1_flat[b, j]
    t = topic[b, i, j]
    c = jnp.clip(conf[b, i, j], 1e-6, 1.0 - 1e-6)
    s_pt = jnp.sum(first * w * jnp.log(t + 1e-6))
    s_pc = jnp.sum(first * w * jnp.log(c))
    c_p = jnp.sum(first)
    return s_pt, s_pc, c_p


def _fine_loss_l2_std(expec_f, expec_f_gt, thr):
    """'l2_with_std' fine loss (training-mode fallback -> 0).  Plain jnp: the (M,3)
    reduction is far too small to amortize a dedicated pallas_call launch."""
    ef = expec_f.astype(jnp.float32)
    gt = expec_f_gt.astype(jnp.float32)
    correct = (jnp.max(jnp.abs(gt), axis=1) < thr).astype(jnp.float32)
    inv_std = 1.0 / jnp.maximum(ef[:, 2], 1e-10)
    # TODO(synk): padded expec_f rows (if jit-padding is used) are not masked out of the mean.
    weight = inv_std / jnp.mean(inv_std)
    off_l2 = jnp.sum((gt - ef[:, :2]) ** 2, axis=1)
    cnt = jnp.sum(correct)
    # TODO(synk): eval-mode "return None" branch of _compute_fine_loss_l2_std is not modeled.
    return jnp.where(cnt > 0,
                     jnp.sum(correct * off_l2 * weight) / jnp.maximum(cnt, 1.0),
                     0.0)


def topicfm_loss(data, config, rng_key, topic_stream_dtype=jnp.bfloat16):
    lc = config["model"]["loss"]
    alpha = float(lc["focal_alpha"])
    c_pos_w = float(lc["pos_weight"])

    conf = data["conf_matrix"].astype(jnp.float32)
    conf_gt = data["conf_matrix_gt"].astype(jnp.float32)
    topic = data["topic_matrix"].astype(jnp.float32)
    N, HW0, HW1 = conf.shape

    # factored coarse weight; the dense (N,HW0,HW1) outer product only ever exists
    # tile-by-tile inside the kernel.
    if "mask0" in data:
        m0_flat = data["mask0"].reshape(N, HW0).astype(jnp.float32)
        m1_flat = data["mask1"].reshape(N, HW1).astype(jnp.float32)
    else:
        m0_flat = jnp.ones((N, HW0), jnp.float32)
        m1_flat = jnp.ones((N, HW1), jnp.float32)

    match_ids = (data["spv_b_ids"], data["spv_i_ids"], data["spv_j_ids"])

    # ---- positive terms: sparse gathers in glue (conf / conf_gt never streamed) ----
    # TODO(synk): assumes spv_{b,i,j}_ids enumerate exactly the conf_gt==1 cells (true for
    # TopicFM supervision); positives absent from the id lists would be dropped.
    s_pt, s_pc, c_p = _sparse_positive_terms(topic, conf, m0_flat, m1_flat, match_ids)

    # ---- negative term: dense Pallas sweep over topic x sampled-negative mask ------
    neg_i8 = sample_non_matches_neg_mask(rng_key, conf_gt, match_ids)

    t0_tgt, t1_tgt, vmem_limit = _hw_budget()
    t0, HW0p = _pick_tile(HW0, t0_tgt, 32)
    t1, HW1p = _pick_tile(HW1, t1_tgt, 128)
    if N * (HW0p // t0) < 2 and t0 >= 64 and t0 % 64 == 0:
        t0 //= 2           # v7x megacore: give both TensorCores at least one row slice

    topic_s = topic.astype(topic_stream_dtype)        # bf16 stream halves the big read
    m0 = m0_flat[:, :, None]
    m1 = m1_flat[:, None, :]
    if (HW0p, HW1p) != (HW0, HW1):
        # zero pads keep both the weighted sum and the negative count exact
        pad = ((0, 0), (0, HW0p - HW0), (0, HW1p - HW1))
        topic_s = jnp.pad(topic_s, pad)
        neg_i8 = jnp.pad(neg_i8, pad)
        m0 = jnp.pad(m0, ((0, 0), (0, HW0p - HW0), (0, 0)))
        m1 = jnp.pad(m1, ((0, 0), (0, 0), (0, HW1p - HW1)))

    partials = coarse_neg_partial_sums(topic_s, neg_i8, m0, m1, t0, t1, vmem_limit)
    totals = jnp.sum(partials, axis=(0, 1, 3))         # (16,)
    s_nt = jnp.sum(totals[0:8])
    c_n = jnp.sum(totals[8:16])

    # "no positive / no negative" fallbacks handled arithmetically on the scalars
    # (== pos/neg_mask[0,0,0]=True; weight[0,0,0]=0; c_pos_w=0 in the reference when
    #  a coarse weight is present; the weight=None fallback variant is not modeled).
    term_pt = jnp.where(c_p > 0, s_pt / jnp.maximum(c_p, 1.0), 0.0)
    term_pc = jnp.where(c_p > 0, s_pc / jnp.maximum(c_p, 1.0), 0.0)
    term_nt = jnp.where(c_n > 0, s_nt / jnp.maximum(c_n, 1.0), 0.0)
    loss_c = (-alpha) * (term_pt + term_nt + c_pos_w * term_pc)
    # TODO(synk): optional 'geo_conf_pairs' BCE branch of compute_coarse_loss is not modeled.

    loss_f = _fine_loss_l2_std(data["expec_f"], data["expec_f_gt"], lc["fine_correct_thr"])

    loss = loss_c * lc["coarse_weight"] + loss_f * lc["fine_weight"]
    loss_scalars = {"loss_c": loss_c, "loss_f": loss_f, "loss": loss}
    return loss, loss_scalars


# ----------------------------------------------------------------------------
# Pure-JAX reference (mirrors the PyTorch math) for verification
# ----------------------------------------------------------------------------
def reference_loss(data, config, rng_key):
    lc = config["model"]["loss"]
    alpha = lc["focal_alpha"]
    conf = jnp.clip(data["conf_matrix"].astype(jnp.float32), 1e-6, 1.0 - 1e-6)
    conf_gt = data["conf_matrix_gt"].astype(jnp.float32)
    topic = data["topic_matrix"].astype(jnp.float32)
    N, HW0, HW1 = conf.shape
    m0 = data["mask0"].reshape(N, -1).astype(jnp.float32)
    m1 = data["mask1"].reshape(N, -1).astype(jnp.float32)
    weight = m0[:, :, None] * m1[:, None, :]

    posf = (conf_gt == 1.0).astype(jnp.float32)
    negf = sample_non_matches_neg_mask(
        rng_key, conf_gt,
        (data["spv_b_ids"], data["spv_i_ids"], data["spv_j_ids"]),
    ).astype(jnp.float32)
    cp, cn = posf.sum(), negf.sum()
    lpt = jnp.sum(posf * (-alpha) * jnp.log(topic + 1e-6) * weight) / cp
    lnt = jnp.sum(negf * (-alpha) * jnp.log(1.0 - topic + 1e-6) * weight) / cn
    lpc = jnp.sum(posf * (-alpha) * jnp.log(conf) * weight) / cp
    loss_c = lpt + lnt + lc["pos_weight"] * lpc

    ef = data["expec_f"].astype(jnp.float32)
    gt = data["expec_f_gt"].astype(jnp.float32)
    correct = (jnp.max(jnp.abs(gt), axis=1) < lc["fine_correct_thr"]).astype(jnp.float32)
    inv_std = 1.0 / jnp.maximum(ef[:, 2], 1e-10)
    w = inv_std / jnp.mean(inv_std)
    off = jnp.sum((gt - ef[:, :2]) ** 2, axis=1)
    loss_f = jnp.sum(correct * off * w) / jnp.maximum(correct.sum(), 1.0)
    return loss_c * lc["coarse_weight"] + loss_f * lc["fine_weight"]


# ----------------------------------------------------------------------------
if __name__ == "__main__":
    key = jax.random.PRNGKey(0)
    keys = jax.random.split(key, 10)

    N, H, W = 2, 16, 16
    HW0 = HW1 = H * W           # 256
    M = 16                      # fine matches
    n_matches = 32              # coarse gt matches

    conf = jax.random.uniform(keys[0], (N, HW0, HW1), jnp.float32, 0.0, 1.0)
    # topic kept away from 1.0 so the bf16-streamed log(1-topic) check stays tight
    topic = jax.random.uniform(keys[1], (N, HW0, HW1), jnp.float32, 5e-3, 0.995)

    b_ids = jax.random.randint(keys[2], (n_matches,), 0, N)
    i_ids = jax.random.randint(keys[3], (n_matches,), 0, HW0)
    j_ids = jax.random.randint(keys[4], (n_matches,), 0, HW1)
    conf_gt = jnp.zeros((N, HW0, HW1), jnp.float32).at[b_ids, i_ids, j_ids].set(1.0)

    mask0 = jnp.ones((N, H, W), bool).at[:, H - 2:, :].set(False)
    mask1 = jnp.ones((N, H, W), bool).at[:, :, W - 2:].set(False)

    expec_f = jnp.concatenate(
        [
            jax.random.normal(keys[5], (M, 2), jnp.float32) * 0.5,
            jax.random.uniform(keys[6], (M, 1), jnp.float32, 0.1, 1.0),
        ],
        axis=1,
    )
    expec_f_gt = jax.random.normal(keys[7], (M, 2), jnp.float32) * 0.8

    data = {
        "conf_matrix": conf,
        "conf_matrix_gt": conf_gt,
        "topic_matrix": topic,
        "mask0": mask0,
        "mask1": mask1,
        "spv_b_ids": b_ids,
        "spv_i_ids": i_ids,
        "spv_j_ids": j_ids,
        "expec_f": expec_f,
        "expec_f_gt": expec_f_gt,
    }

    sample_key = keys[8]
    ref = jax.block_until_ready(reference_loss(data, CONFIG, sample_key))

    # 1) exact-math check: stream topic in f32 through the kernel
    loss32, _ = topicfm_loss(data, CONFIG, sample_key, topic_stream_dtype=jnp.float32)
    loss32 = jax.block_until_ready(loss32)
    np.testing.assert_allclose(float(loss32), float(ref), rtol=2e-3, atol=2e-4)

    # 2) bandwidth-optimized default: bf16 topic stream (slightly looser tolerance,
    #    only the sampled-negative log term sees the bf16 quantization)
    loss_bf, scalars = topicfm_loss(data, CONFIG, sample_key)
    loss_bf = jax.block_until_ready(loss_bf)
    np.testing.assert_allclose(float(loss_bf), float(ref), rtol=1e-2, atol=1e-3)

    print("KERNEL_OK")
</pallas_src>

<mosaic_0001>
module attributes {stable_mosaic.version = 11 : i64} {
  func.func @_coarse_neg_kernel(%arg0: i32, %arg1: i32, %arg2: i32, %arg3: memref<1x256x256xf32, #tpu.memory_space<vmem>>, %arg4: memref<1x256x256xi8, #tpu.memory_space<vmem>>, %arg5: memref<1x256x1xf32, #tpu.memory_space<vmem>>, %arg6: memref<1x1x256xf32, #tpu.memory_space<vmem>>, %arg7: memref<1x1x16x256xf32, #tpu.memory_space<vmem>>, %arg8: memref<8x256xf32, #tpu.memory_space<vmem>>, %arg9: memref<8x256xf32, #tpu.memory_space<vmem>>) attributes {dimension_semantics = [#tpu.dimension_semantics<parallel>, #tpu.dimension_semantics<parallel>, #tpu.dimension_semantics<arbitrary>], iteration_bounds = array<i64: 2, 1, 1>, scalar_prefetch = 0 : i64, scratch_operands = 2 : i64, tpu.core_type = #tpu.core_type<tc>, window_params = [{transform_indices = @transform_0, window_bounds = array<i64: 1, 256, 256>}, {transform_indices = @transform_1, window_bounds = array<i64: 1, 256, 256>}, {transform_indices = @transform_2, window_bounds = array<i64: 1, 256, 1>}, {transform_indices = @transform_3, window_bounds = array<i64: 1, 1, 256>}, {transform_indices = @transform_4, window_bounds = array<i64: 1, 1, 16, 256>}]} {
    %c0_i32 = arith.constant 0 : i32
    %0 = arith.cmpi eq, %arg2, %c0_i32 : i32
    %1 = arith.extui %0 : i1 to i32
    %c0_i32_0 = arith.constant 0 : i32
    %2 = arith.cmpi ne, %1, %c0_i32_0 : i32
    scf.if %2 {
      %cst_25 = arith.constant 0.000000e+00 : f32
      %35 = vector.broadcast %cst_25 : f32 to vector<8x256xf32>
      %c0_26 = arith.constant 0 : index
      %c0_27 = arith.constant 0 : index
      %36 = vector.load %arg8[%c0_26, %c0_27] : memref<8x256xf32, #tpu.memory_space<vmem>>, vector<8x256xf32>
      tpu.vector_store %arg8[%c0_26, %c0_27], %35 {strides = array<i32>} : memref<8x256xf32, #tpu.memory_space<vmem>>, vector<8x256xf32>,
      %cst_28 = arith.constant 0.000000e+00 : f32
      %37 = vector.broadcast %cst_28 : f32 to vector<8x256xf32>
      %c0_29 = arith.constant 0 : index
      %c0_30 = arith.constant 0 : index
      %38 = vector.load %arg9[%c0_29, %c0_30] : memref<8x256xf32, #tpu.memory_space<vmem>>, vector<8x256xf32>
      tpu.vector_store %arg9[%c0_29, %c0_30], %37 {strides = array<i32>} : memref<8x256xf32, #tpu.memory_space<vmem>>, vector<8x256xf32>,
    } else {
    }
    %c0 = arith.constant 0 : index
    %c0_1 = arith.constant 0 : index
    %c0_2 = arith.constant 0 : index
    %3 = vector.load %arg5[%c0, %c0_1, %c0_2] : memref<1x256x1xf32, #tpu.memory_space<vmem>>, vector<1x256x1xf32>
    %4 = vector.shape_cast %3 : vector<1x256x1xf32> to vector<256x1xf32>
    %c0_3 = arith.constant 0 : index
    %c0_4 = arith.constant 0 : index
    %c0_5 = arith.constant 0 : index
    %5 = vector.load %arg6[%c0_3, %c0_4, %c0_5] : memref<1x1x256xf32, #tpu.memory_space<vmem>>, vector<1x1x256xf32>
    %6 = vector.shape_cast %5 : vector<1x1x256xf32> to vector<1x256xf32>
    %7 = vector.broadcast %4 : vector<256x1xf32> to vector<256x256xf32>
    %8 = vector.broadcast %6 : vector<1x256xf32> to vector<256x256xf32>
    %9 = arith.mulf %7, %8 : vector<256x256xf32>
    %c0_6 = arith.constant 0 : index
    %c0_7 = arith.constant 0 : index
    %c0_8 = arith.constant 0 : index
    %10 = vector.load %arg4[%c0_6, %c0_7, %c0_8] : memref<1x256x256xi8, #tpu.memory_space<vmem>>, vector<1x256x256xi8>
    %11 = vector.shape_cast %10 : vector<1x256x256xi8> to vector<256x256xi8>
    %12 = arith.sitofp %11 : vector<256x256xi8> to vector<256x256xf32>
    %c0_9 = arith.constant 0 : index
    %c0_10 = arith.constant 0 : index
    %c0_11 = arith.constant 0 : index
    %13 = vector.load %arg3[%c0_9, %c0_10, %c0_11] : memref<1x256x256xf32, #tpu.memory_space<vmem>>, vector<1x256x256xf32>
    %14 = vector.shape_cast %13 : vector<1x256x256xf32> to vector<256x256xf32>
    %15 = arith.mulf %12, %9 : vector<256x256xf32>
    %cst = arith.constant 1.000000e+00 : f32
    %16 = vector.broadcast %cst : f32 to vector<256x256xf32>
    %17 = arith.subf %16, %14 : vector<256x256xf32>
    %cst_12 = arith.constant 9.99999997E-7 : f32
    %18 = vector.broadcast %cst_12 : f32 to vector<256x256xf32>
    %19 = arith.addf %17, %18 : vector<256x256xf32>
    %20 = math.log %19 : vector<256x256xf32>
    %21 = arith.mulf %15, %20 : vector<256x256xf32>
    %c0_13 = arith.constant 0 : index
    %c0_14 = arith.constant 0 : index
    %22 = vector.load %arg8[%c0_13, %c0_14] : memref<8x256xf32, #tpu.memory_space<vmem>>, vector<8x256xf32>
    %23 = vector.shape_cast %21 : vector<256x256xf32> to vector<32x8x256xf32>
    %cst_15 = arith.constant dense<0.000000e+00> : vector<8x256xf32>
    %24 = vector.multi_reduction <add>, %23, %cst_15 [0] : vector<32x8x256xf32> to vector<8x256xf32>
    %25 = arith.addf %22, %24 : vector<8x256xf32>
    %c0_16 = arith.constant 0 : index
    %c0_17 = arith.constant 0 : index
    %26 = vector.load %arg8[%c0_16, %c0_17] : memref<8x256xf32, #tpu.memory_space<vmem>>, vector<8x256xf32>
    tpu.vector_store %arg8[%c0_16, %c0_17], %25 {strides = array<i32>} : memref<8x256xf32, #tpu.memory_space<vmem>>, vector<8x256xf32>,
    %c0_18 = arith.constant 0 : index
    %c0_19 = arith.constant 0 : index
    %27 = vector.load %arg9[%c0_18, %c0_19] : memref<8x256xf32, #tpu.memory_space<vmem>>, vector<8x256xf32>
    %28 = vector.shape_cast %12 : vector<256x256xf32> to vector<32x8x256xf32>
    %cst_20 = arith.constant dense<0.000000e+00> : vector<8x256xf32>
    %29 = vector.multi_reduction <add>, %28, %cst_20 [0] : vector<32x8x256xf32> to vector<8x256xf32>
    %30 = arith.addf %27, %29 : vector<8x256xf32>
    %c0_21 = arith.constant 0 : index
    %c0_22 = arith.constant 0 : index
    %31 = vector.load %arg9[%c0_21, %c0_22] : memref<8x256xf32, #tpu.memory_space<vmem>>, vector<8x256xf32>
    tpu.vector_store %arg9[%c0_21, %c0_22], %30 {strides = array<i32>} : memref<8x256xf32, #tpu.memory_space<vmem>>, vector<8x256xf32>,
    %c0_i32_23 = arith.constant 0 : i32
    %32 = arith.cmpi eq, %arg2, %c0_i32_23 : i32
    %33 = arith.extui %32 : i1 to i32
    %c0_i32_24 = arith.constant 0 : i32
    %34 = arith.cmpi ne, %33, %c0_i32_24 : i32
    scf.if %34 {
      %c0_25 = arith.constant 0 : index
      %c0_26 = arith.constant 0 : index
      %35 = vector.load %arg8[%c0_25, %c0_26] : memref<8x256xf32, #tpu.memory_space<vmem>>, vector<8x256xf32>
      %c0_27 = arith.constant 0 : index
      %c0_28 = arith.constant 0 : index
      %c0_29 = arith.constant 0 : index
      %c0_30 = arith.constant 0 : index
      %36 = vector.load %arg7[%c0_27, %c0_28, %c0_29, %c0_30] : memref<1x1x16x256xf32, #tpu.memory_space<vmem>>, vector<1x1x8x256xf32>
      %37 = vector.shape_cast %36 : vector<1x1x8x256xf32> to vector<8x256xf32>
      %38 = vector.shape_cast %35 : vector<8x256xf32> to vector<1x1x8x256xf32>
      tpu.vector_store %arg7[%c0_27, %c0_28, %c0_29, %c0_30], %38 {strides = array<i32>} : memref<1x1x16x256xf32, #tpu.memory_space<vmem>>, vector<1x1x8x256xf32>,
      %c0_31 = arith.constant 0 : index
      %c0_32 = arith.constant 0 : index
      %39 = vector.load %arg9[%c0_31, %c0_32] : memref<8x256xf32, #tpu.memory_space<vmem>>, vector<8x256xf32>
      %c0_33 = arith.constant 0 : index
      %c0_34 = arith.constant 0 : index
      %c8 = arith.constant 8 : index
      %c0_35 = arith.constant 0 : index
      %40 = vector.load %arg7[%c0_33, %c0_34, %c8, %c0_35] : memref<1x1x16x256xf32, #tpu.memory_space<vmem>>, vector<1x1x8x256xf32>
      %41 = vector.shape_cast %40 : vector<1x1x8x256xf32> to vector<8x256xf32>
      %42 = vector.shape_cast %39 : vector<8x256xf32> to vector<1x1x8x256xf32>
      tpu.vector_store %arg7[%c0_33, %c0_34, %c8, %c0_35], %42 {strides = array<i32>} : memref<1x1x16x256xf32, #tpu.memory_space<vmem>>, vector<1x1x8x256xf32>,
    } else {
    }
    return
  }
  func.func @transform_0(%arg0: i32, %arg1: i32, %arg2: i32) -> (i32, i32, i32) {
    %c0_i32 = arith.constant 0 : i32
    return %arg0, %arg1, %arg2 : i32, i32, i32
  }
  func.func @transform_1(%arg0: i32, %arg1: i32, %arg2: i32) -> (i32, i32, i32) {
    %c0_i32 = arith.constant 0 : i32
    return %arg0, %arg1, %arg2 : i32, i32, i32
  }
  func.func @transform_2(%arg0: i32, %arg1: i32, %arg2: i32) -> (i32, i32, i32) {
    %c0_i32 = arith.constant 0 : i32
    %c0_i32_0 = arith.constant 0 : i32
    return %arg0, %arg1, %c0_i32 : i32, i32, i32
  }
  func.func @transform_3(%arg0: i32, %arg1: i32, %arg2: i32) -> (i32, i32, i32) {
    %c0_i32 = arith.constant 0 : i32
    %c0_i32_0 = arith.constant 0 : i32
    return %arg0, %c0_i32, %arg2 : i32, i32, i32
  }
  func.func @transform_4(%arg0: i32, %arg1: i32, %arg2: i32) -> (i32, i32, i32, i32) {
    %c0_i32 = arith.constant 0 : i32
    %c0_i32_0 = arith.constant 0 : i32
    %c0_i32_1 = arith.constant 0 : i32
    return %arg0, %arg1, %c0_i32, %c0_i32_0 : i32, i32, i32, i32
  }
}

</mosaic_0001>

<bundles_post_ra>
// kernel: tpu_custom_call.1
= control target key start
LH: loop header
LB: loop body
LE: loop exit
PB: predicated region body
PF: predicated region fallthrough
CT: control target
= control target key end

     0   :  { %9 = vsyncpa [#allocation5], 0  ;;  %s2936_s0 = inlined_call_operand.hbm [shape: f32[2,256,256], index: 0, kind: input, shape index: {}]   ;;  %s2937_s1 = inlined_call_operand.vmem [shape: s8[2,256,256], index: 1, kind: input, shape index: {}]   ;;  %s2938_s2 = inlined_call_operand.vmem [shape: f32[2,256,1], index: 2, kind: input, shape index: {}]   ;;  %s2939_s3 = inlined_call_operand.vmem [shape: f32[2,1,256], index: 3, kind: input, shape index: {}]   ;;  %s2940_s4 = inlined_call_operand.hbm [shape: f32[2,1,16,256], index: 4, kind: output, shape index: {}]  }
   0x1   :  { %11 = vsyncpa [#allocation5 + $0x1], 0 }
   0x2   :  { %12 = vsyncpa [#allocation6], 0 }
   0x3   :  { %14 = vsyncpa [#allocation6 + $0x1], 0  ;;  %s1919_s15 = smov 0   ;;  %s1921_s16 = smov 0  }
   0x4   :  { %s1923_s17 = smov 0   ;;  %s1925_s18 = smov 0  }
   0x5   :  { %s1927_s19 = smov 0   ;;  %s1929_s20 = smov 0  }
   0x6 LB: > { %s1552_s21 = sadd.s32 4294967295, %s1885_s20   ;;  %s1553_s22 = sadd.s32 4294967294, %s1885_s20   ;;  %s1885_s20 = sphi %s1929_s20, %s20_s20   ;;  %s1881_s19 = sphi %s1927_s19, %s3173_s19   ;;  %s1877_s18 = sphi %s1925_s18, %s3172_s18   ;;  %s1873_s17 = sphi %s1923_s17, %s3171_s17   ;;  %s1869_s16 = sphi %s1921_s16, %s3170_s16   ;;  %s1865_s15 = sphi %s1919_s15, %s3169_s15  }
   0x7   : > { %s39_s23 = sadd.s32 1, %s1881_s19  ;;  %s50_s24 = sadd.s32 1, %s1873_s17 }
   0x8   : > { %p41_p0 = scmp.ge.s32.totalorder %s39_s23, 2  ;;  %p57_p1 = scmp.ne.s32.totalorder %s1873_s17, %s1869_s16 }
   0x9   : > { %p58_p2 = scmp.eq.s32.totalorder %s1885_s20, 0  ;;  %p63_p3 = scmp.ne.s32.totalorder %s1869_s16, %s1865_s15 }
   0xa   : > { %s3175_s23 = smov (%p41_p0, %s39_s23), 0  ;;  %p64_p5 = scmp.eq.s32.totalorder %s1552_s21, 0 }
   0xb   : > { %p1960_p4 = por %p58_p2, %p57_p1  ;;  %s43_s26 = ssub.s32 %s1881_s19, %s3175_s23 }
   0xc   : > { %p175_p6 = scmp.eq.s32.totalorder %s1552_s21, 1  ;;  %p48_p7 = scmp.eq.s32.totalorder %s43_s26, 0 }
   0xd   : > { %p1966_p8 = por %p64_p5, %p63_p3  ;;  %p181_p10 = scmp.eq.s32.totalorder %s1553_s22, 1 }
   0xe   : > { %p1970_p9 = por %p175_p6, %p57_p1  ;;  %p1588_p13 = scmp.lt.s32.totalorder %s1885_s20, 2 }
   0xf   : > { %s1975_s29 = scalar_select %p48_p7, %s1873_s17, %s50_s24  }
  0x10   : > { %s2998_s28 = scalar_select %p1970_p9, 1, 0 }
  0x11   : > { %p1977_p11 = por %p181_p10, %p63_p3  ;;  %s201_s5 = sand.u32 1, %s1873_s17  }
  0x12   : > { %s1556_s6 = sshll.u32 %s201_s5, 9  ;;  %s1572_s7 = sshll.u32 %s1881_s19, 13 }
  0x13   : > { %s2999_s30 = scalar_select %p1977_p11, 1, 0 }
  0x14   : > { %s1988_s10 = scalar_lea.hbm %s2936_s0, %s1572_s7  ;;  %s205_s11 = scalar_lea.vmem [#allocation4], %s1556_s6 }
  0x15   : > { %s217_s12 = sshll.u32 %s205_s11, 4  ;;  %p1994_p0 = pnand %p1588_p13, %p1960_p4  ;;  %s1990_s12 = int_to_ptr.vmem [resolvable:$true] %s217_s12 }
  0x16   : > { %s1999_s14 = scalar_lea.sflag [#allocation5], %s201_s5  ;;  %s1773_s21 = scalar_lea.hbm %s1988_s10, 8192 }
  0x17   : > { %p1774_p2 = scmp.ne.s32.totalorder %s1988_s10, %s1773_s21  ;;  %p1775_p3 = pneg %p1994_p0 }
  0x18   : > { %s1778_s25 = scalar_lea.hbm %s2936_s0, 16384  ;;  %p1779_p4 = scmp.lt.u32.totalorder %s1988_s10, %s2936_s0 }
  0x19   : > { %p1776_p5 = pnand %p1775_p3, %p1774_p2  ;;  %p1780_p7 = scmp.lt.u32.totalorder %s1778_s25, %s1773_s21 }
  0x1a   : > { %p1782_p13 = scmp.lt.u32.totalorder %s1773_s21, %s1988_s10 }
  0x1b   : > { %p1777_p6 = pneg %p1776_p5  ;;  %p1781_p10 = por %p1780_p7, %p1779_p4 }
  0x1d   : > { %p1783_p12 = por %p1782_p13, %p1781_p10 }
  0x1f   : > { %p1784_p1 = pnand %p1783_p12, %p1777_p6 }
  0x21   : > { %1787 = shalt.err (!%p1784_p1)
}
  0x22   : > { %s1788_s5 = scalar_lea.vmem %s1990_s12, 8192  ;;  %s1887_s7 = smov [#allocation4]  }
  0x23   : > { %p1789_p2 = scmp.ne.s32.totalorder %s1990_s12, %s1788_s5  ;;  %s1793_s8 = sshll.u32 %s1887_s7, 4  ;;  %s1794_s8 = int_to_ptr.vmem [resolvable:$false] %s1793_s8 }
  0x24   : > { %s1795_s9 = scalar_lea.vmem %s1794_s8, 16384  ;;  %p1796_p9 = scmp.lt.s32.totalorder %s1990_s12, %s1794_s8 }
  0x25   : > { %p1791_p5 = pnand %p1789_p2, %p1775_p3  ;;  %p1797_p4 = scmp.lt.s32.totalorder %s1795_s9, %s1788_s5 }
  0x27   : > { %p1792_p11 = pneg %p1791_p5  ;;  %p1798_p7 = por %p1797_p4, %p1796_p9 }
  0x29   : > { %p1799_p10 = pnand %p1798_p7, %p1792_p11 }
  0x2b   : > { %1802 = shalt.err (!%p1799_p10)
}
  0x2c   : > { %s1888_s11 = smov 256   ;;  %s1889_s21 = smov 16  }
  0x2d   : > { %1583 = dma.hbm_to_vmem [thread:$0]  (!%p1994_p0), %s1988_s10, 8192, %s1990_s12, %s1999_s14, %s1888_s11, %s1888_s11, %s1889_s21  }
  0x2e   : > { %p269_p12 = scmp.lt.s32.totalorder %s1885_s20, 3  ;;  %p3001_p1 = scmp.ge.s32.totalorder %s1885_s20, 1 }
  0x30   : > { %p270_p3 = pnand %p3001_p1, %p269_p12 }
  0x32   : > { %273 = sbr.rel (%p270_p3) target bundleno = 284 (0x11c), region = 36 }
  0x39   : > { %s2031_s22 = sand.u32 1, %s1869_s16  }
  0x3a   : > { %s1560_s24 = sshll.u32 %s2031_s22, 9  ;;  %s276_s25 = scalar_lea.sflag [#allocation5], %s2031_s22 }
  0x3b   : > { %s2035_s26 = scalar_lea.vmem [#allocation4], %s1560_s24 }
  0x3c   : > { %1856 = dma.done.wait (%p1966_p8), %s276_s25, 8192  }
  0x3d   : > { %1858 = vsyncadd (%p1966_p8), %s276_s25, 4294959104  ;;  %p339_p9 = scmp.lt.s32.totalorder %s1877_s18, 1  ;;  %v1890_v0 = vmov 0   ;;  %v796_v13 = vld [vmem:[%s2035_s26 + $0x20] sm:$0xff]  ;;  %v797_v14 = vld [vmem:[%s2035_s26 + $0x28] sm:$0xff]  ;;  %s1561_s25 = sshll.u32 %s2031_s22, 5 }
  0x3e   : > { %1644 = vset.pattern.permute.xlu1 %v1890_v0  ;;  %1643 = vset.pattern.permute.xlu0 %v1890_v0  ;;  %v924_v23 = vsub.f32 1.0, %v796_v13  ;;  %v925_v24 = vsub.f32 1.0, %v797_v14  ;;  %v792_v25 = vld [vmem:[%s2035_s26] sm:$0xff]  ;;  %v793_v30 = vld [vmem:[%s2035_s26 + $0x8] sm:$0xff]  ;;  %v798_v43 = vld [vmem:[%s2035_s26 + $0x30] sm:$0xff]  ;;  %p3166_p11 = scmp.ne.s32.totalorder %s2998_s28, 0 }
  0x3f   : > { %s2043_s10 = scalar_select %p339_p9, %s1877_s18, 1  ;;  %v920_v33 = vsub.f32 1.0, %v792_v25  ;;  %v921_v45 = vsub.f32 1.0, %v793_v30  ;;  %v799_v46 = vld [vmem:[%s2035_s26 + $0x38] sm:$0xff]  ;;  %v926_v53 = vsub.f32 1.0, %v798_v43  ;;  %v794_v58 = vld [vmem:[%s2035_s26 + $0x10] sm:$0xff] }
  0x40   : > { %v988_v41 = vadd.f32 1e-06, %v924_v23  ;;  %v989_v44 = vadd.f32 1e-06, %v925_v24  ;;  %v927_v57 = vsub.f32 1.0, %v799_v46  ;;  %v795_v61 = vld [vmem:[%s2035_s26 + $0x18] sm:$0xff] }
  0x41   : > { %s1574_s12 = sshll.u32 %s2043_s10, 8  ;;  %s1573_s27 = sshll.u32 %s2043_s10, 7  ;;  %v984_v52 = vadd.f32 1e-06, %v920_v33  ;;  %v985_v60 = vadd.f32 1e-06, %v921_v45 }
  0x42   : > { %s2049_s6 = scalar_lea.vmem %s2938_s2, %s1574_s12  ;;  %s2061_s8 = scalar_lea.vmem %s2937_s1, %s1573_s27  ;;  %1645 = vlog2.f32 %v988_v41  ;;  %v802_v0 = vld [vmem:[%s2035_s26 + $0x50] sm:$0xff]  ;;  %v801_v30 = vld [vmem:[%s2035_s26 + $0x48] sm:$0xff] }
  0x43   : > { %v382_v1 = vld [vmem:[%s2049_s6 + $0x10] sm:$0xff]  ;;  %v380_v2 = vld [vmem:[%s2049_s6] sm:$0xff]  ;;  %v383_v3 = vld [vmem:[%s2049_s6 + $0x18] sm:$0xff]  ;;  %1647 = vlog2.f32 %v989_v44  ;;  %v930_v14 = vsub.f32 1.0, %v802_v0  ;;  %s1566_s9 = sshll.u32 %s2043_s10, 1  ;;  %s1575_s10 = sshll.u32 %s1877_s18, 9 }
  0x44   : > { %425 = vperm.xlu1 %1644, %v382_v1   ;;  %415 = vperm.xlu0 %1643, %v380_v2   ;;  %v381_v4 = vld [vmem:[%s2049_s6 + $0x8] sm:$0xff]  ;;  %v384_v6 = vld [vmem:[%s2049_s6 + $0x20] sm:$0xff]  ;;  %v387_v7 = vld [vmem:[%s2049_s6 + $0x38] sm:$0xff]  ;;  %1649 = vlog2.f32 %v984_v52  ;;  %s370_s24 = scalar_lea.vmem %s2939_s3, %s1566_s9  ;;  %s1388_s18 = scalar_lea.sflag [#allocation6], %s2031_s22 }
  0x45   : > { %v385_v5 = vld [vmem:[%s2049_s6 + $0x28] sm:$0xff]  ;;  %v386_v8 = vld [vmem:[%s2049_s6 + $0x30] sm:$0xff]  ;;  %v648_v9 = vld [vmem:[%s2061_s8] sm:$0xff]  ;;  %1651 = vlog2.f32 %v985_v60  ;;  %s1891_s5 = smov [#allocation7]  }
  0x46   : > { %v649_v10 = vld [vmem:[%s2061_s8 + $0x8] sm:$0xff]  ;;  %v388_v12 = vld [vmem:[%s2049_s6 + $0x40] sm:$0xff]  ;;  %v664_v15 = vunpack.c.0.s8 %v648_v9  ;;  %v668_v17 = vunpack.c.2.s8 %v648_v9  ;;  %v666_v18 = vunpack.c.1.s8 %v648_v9  ;;  %v391_v20 = vld [vmem:[%s2049_s6 + $0x58] sm:$0xff]  ;;  %v670_v31 = vunpack.c.3.s8 %v648_v9  ;;  %s1807_s7 = sshll.u32 %s1891_s5, 4  ;;  %s1808_s7 = int_to_ptr.vmem [resolvable:$false] %s1807_s7 }
  0x47   : > { %v389_v11 = vld [vmem:[%s2049_s6 + $0x48] sm:$0xff]  ;;  %v665_v16 = vunpack.c.0.s8 %v649_v10  ;;  %v667_v19 = vunpack.c.1.s8 %v649_v10  ;;  %v390_v21 = vld [vmem:[%s2049_s6 + $0x50] sm:$0xff]  ;;  %v669_v22 = vunpack.c.2.s8 %v649_v10  ;;  %v2093_v37 = vld [vmem:[%s2061_s8 + $0x18] sm:$0xff]  ;;  %v671_v42 = vunpack.c.3.s8 %v649_v10 }
  0x48   : > { %430 = vperm.xlu1 %1644, %v383_v3   ;;  %420 = vperm.xlu0 %1643, %v381_v4   ;;  %v2074_v26 = vcvt.s32.f32 %v664_v15  ;;  %v2078_v28 = vcvt.s32.f32 %v666_v18  ;;  %v2083_v32 = vcvt.s32.f32 %v668_v17  ;;  %v2090_v36 = vld [vmem:[%s2061_s8 + $0x10] sm:$0xff]  ;;  %v393_v38 = vld [vmem:[%s2049_s6 + $0x68] sm:$0xff]  ;;  %v392_v39 = vld [vmem:[%s2049_s6 + $0x60] sm:$0xff]  ;;  %v2102_v48 = vcvt.s32.f32 %v670_v31 }
  0x49   : > { %v2076_v27 = vcvt.s32.f32 %v665_v16  ;;  %v2080_v29 = vcvt.s32.f32 %v667_v19  ;;  %v2097_v40 = vcvt.s32.f32 %v669_v22  ;;  %v672_v50 = vunpack.c.0.s8 %v2090_v36  ;;  %v395_v54 = vld [vmem:[%s2049_s6 + $0x78] sm:$0xff]  ;;  %v394_v55 = vld [vmem:[%s2049_s6 + $0x70] sm:$0xff]  ;;  %v800_v17 = vld [vmem:[%s2035_s26 + $0x40] sm:$0xff] }
  0x4a   : > { %v1310_v34 = vadd.f32 %v2078_v28, %v2074_v26  ;;  %v673_v51 = vunpack.c.0.s8 %v2093_v37  ;;  %v2109_v56 = vcvt.s32.f32 %v671_v42  ;;  %v674_v62 = vunpack.c.1.s8 %v2090_v36  ;;  %v399_v23 = vld [vmem:[%s2049_s6 + $0x98] sm:$0xff]  ;;  %v398_v24 = vld [vmem:[%s2049_s6 + $0x90] sm:$0xff]  ;;  %v2148_v44 = vld [vmem:[%s2061_s8 + $0x20] sm:$0xff] }
  0x4b   : > { %v1341_v35 = vadd.f32 %v2080_v29, %v2076_v27  ;;  %v675_v63 = vunpack.c.1.s8 %v2093_v37  ;;  %v2117_v1 = vcvt.s32.f32 %v672_v50  ;;  %v574_v4 = vlaneseq  ;;  %v2151_v45 = vld [vmem:[%s2061_s8 + $0x28] sm:$0xff]  ;;  %v806_v50 = vld [vmem:[%s2035_s26 + $0x70] sm:$0xff] }
  0x4c   : > { %440 = vperm.xlu1 %1644, %v385_v5   ;;  %435 = vperm.xlu0 %1643, %v384_v6   ;;  %v1311_v47 = vadd.f32 %v1310_v34, %v2083_v32  ;;  %v2119_v2 = vcvt.s32.f32 %v673_v51  ;;  %v990_v5 = vadd.f32 1e-06, %v926_v53  ;;  %v922_v6 = vsub.f32 1.0, %v794_v58  ;;  %v400_v51 = vld [vmem:[%s2049_s6 + $0xa0] sm:$0xff] }
  0x4d   : > { %v1342_v49 = vadd.f32 %v1341_v35, %v2097_v40  ;;  %v991_v9 = vadd.f32 1e-06, %v927_v57  ;;  %v923_v10 = vsub.f32 1.0, %v795_v61  ;;  %v2127_v15 = vcvt.s32.f32 %v674_v62  ;;  %v807_v57 = vld [vmem:[%s2035_s26 + $0x78] sm:$0xff]  ;;  %v804_v58 = vld [vmem:[%s2035_s26 + $0x60] sm:$0xff] }
  0x4e   : > { %v1312_v59 = vadd.f32 %v1311_v47, %v2102_v48  ;;  %v2129_v16 = vcvt.s32.f32 %v675_v63  ;;  %v676_v18 = vunpack.c.2.s8 %v2090_v36  ;;  %v677_v19 = vunpack.c.2.s8 %v2093_v37 }
  0x4f   : > { %v1343_v3 = vadd.f32 %v1342_v49, %v2109_v56  ;;  %3002 = vst [vmem:[#allocation10_spill] sm:$0xff] %v2127_v15  ;;  %1653 = vlog2.f32 %v990_v5  ;;  %v987_v25 = vadd.f32 1e-06, %v923_v10  ;;  %v994_v34 = vadd.f32 1e-06, %v930_v14 }
  0x50   : > { %450 = vperm.xlu1 %1644, %v387_v7   ;;  %445 = vperm.xlu0 %1643, %v386_v8   ;;  %v397_v7 = vld [vmem:[%s2049_s6 + $0x88] sm:$0xff]  ;;  %v396_v8 = vld [vmem:[%s2049_s6 + $0x80] sm:$0xff]  ;;  %3003 = vst [vmem:[#allocation11_spill] sm:$0xff] %v2129_v16  ;;  %1655 = vlog2.f32 %v991_v9  ;;  %v928_v35 = vsub.f32 1.0, %v800_v17  ;;  %v679_v41 = vunpack.c.3.s8 %v2093_v37  ;;  %v2143_v42 = vcvt.s32.f32 %v676_v18  ;;  %v402_v9 = vld [vmem:[%s2049_s6 + $0xb0] sm:$0xff] }
  0x51   : > { %v1344_v13 = vadd.f32 %v1343_v3, %v2119_v2  ;;  %v2145_v43 = vcvt.s32.f32 %v677_v19  ;;  %v929_v49 = vsub.f32 1.0, %v801_v30  ;;  %v401_v37 = vld [vmem:[%s2049_s6 + $0xa8] sm:$0xff]  ;;  %v681_v60 = vunpack.c.0.s8 %v2151_v45 }
  0x52   : > { %3004 = vst [vmem:[#allocation12_spill] sm:$0xff] %v2143_v42  ;;  %v992_v61 = vadd.f32 1e-06, %v928_v35  ;;  %v2166_v63 = vcvt.s32.f32 %v679_v41  ;;  %v934_v0 = vsub.f32 1.0, %v806_v50  ;;  %v805_v3 = vld [vmem:[%s2035_s26 + $0x68] sm:$0xff]  ;;  %v935_v10 = vsub.f32 1.0, %v807_v57 }
  0x53   : > { %v1345_v33 = vadd.f32 %v1344_v13, %v2129_v16  ;;  %3005 = vst [vmem:[#allocation13_spill] sm:$0xff] %v2145_v43  ;;  %v682_v17 = vunpack.c.1.s8 %v2148_v44  ;;  %v683_v18 = vunpack.c.1.s8 %v2151_v45 }
  0x54   : > { %460 = vperm.xlu1 %1644, %v389_v11   ;;  %455 = vperm.xlu0 %1643, %v388_v12   ;;  %v803_v11 = vld [vmem:[%s2035_s26 + $0x58] sm:$0xff]  ;;  %v1313_v12 = vadd.f32 %v1312_v59, %v2117_v1  ;;  %v680_v59 = vunpack.c.0.s8 %v2148_v44  ;;  %3007 = vst [vmem:[#allocation15_spill] sm:$0xff] %v2166_v63 }
  0x55   : > { %v931_v22 = vsub.f32 1.0, %v803_v11  ;;  %v1346_v53 = vadd.f32 %v1345_v33, %v2145_v43  ;;  %v932_v11 = vsub.f32 1.0, %v804_v58  ;;  %v811_v33 = vld [vmem:[%s2035_s26 + $0x98] sm:$0xff]  ;;  %v2423_v43 = vld [vmem:[%s2061_s8 + $0x68] sm:$0xff] }
  0x56   : > { %v1314_v31 = vadd.f32 %v1313_v12, %v2127_v15  ;;  %v2179_v19 = vcvt.s32.f32 %v680_v59  ;;  %v849_v15 = vld [vmem:[%s2035_s26 + $0x1c8] sm:$0xff] }
  0x57   : > { %v995_v47 = vadd.f32 1e-06, %v931_v22  ;;  %v1347_v13 = vadd.f32 %v1346_v53, %v2166_v63  ;;  %v2201_v53 = vcvt.s32.f32 %v683_v18  ;;  %v715_v63 = vunpack.c.1.s8 %v2423_v43 }
  0x58   : > { %470 = vperm.xlu1 %1644, %v391_v20   ;;  %465 = vperm.xlu0 %1643, %v390_v21   ;;  %v2134_v20 = vshrl.u32 %v574_v4, 7  ;;  %v986_v21 = vadd.f32 1e-06, %v922_v6  ;;  %v1315_v52 = vadd.f32 %v1314_v31, %v2143_v42  ;;  %3008 = vst [vmem:[#allocation16_spill] sm:$0xff] %v2179_v19  ;;  %v810_v31 = vld [vmem:[%s2035_s26 + $0x90] sm:$0xff] }
  0x59   : > { %3012 = vst [vmem:[#allocation20_spill] sm:$0xff] %v2201_v53  ;;  %v938_v59 = vsub.f32 1.0, %v810_v31 }
  0x5a   : > { %1657 = vlog2.f32 %v986_v21  ;;  %v2181_v21 = vcvt.s32.f32 %v681_v60  ;;  %v939_v60 = vsub.f32 1.0, %v811_v33 }
  0x5b   : > { %1659 = vlog2.f32 %v987_v25  ;;  %v933_v25 = vsub.f32 1.0, %v805_v3  ;;  %v809_v3 = vld [vmem:[%s2035_s26 + $0x88] sm:$0xff]  ;;  %v1002_v31 = vadd.f32 1e-06, %v938_v59 }
  0x5c   : > { %480 = vperm.xlu1 %1644, %v393_v38   ;;  %475 = vperm.xlu0 %1643, %v392_v39   ;;  %v1646_v38 = vpop.eup %1645  ;;  %v678_v39 = vunpack.c.3.s8 %v2090_v36  ;;  %1661 = vlog2.f32 %v994_v34  ;;  %3009 = vst [vmem:[#allocation17_spill] sm:$0xff] %v2181_v21  ;;  %v1348_v35 = vadd.f32 %v1347_v13, %v2181_v21  ;;  %v687_v13 = vunpack.c.3.s8 %v2151_v45 }
  0x5d   : > { %v1648_v46 = vpop.eup %1647  ;;  %v2169_v5 = vmul.f32 0.6931472, %v1646_v38  ;;  %1663 = vlog2.f32 %v995_v47  ;;  %v405_v38 = vld [vmem:[%s2049_s6 + $0xc8] sm:$0xff]  ;;  %v684_v47 = vunpack.c.2.s8 %v2148_v44  ;;  %v997_v58 = vadd.f32 1e-06, %v933_v25 }
  0x5e   : > { %v2164_v62 = vcvt.s32.f32 %v678_v39  ;;  %v2171_v6 = vmul.f32 0.6931472, %v1648_v46  ;;  %1665 = vlog2.f32 %v992_v61  ;;  %v404_v39 = vld [vmem:[%s2049_s6 + $0xc0] sm:$0xff]  ;;  %v999_v46 = vadd.f32 1e-06, %v935_v10  ;;  %v2205_v61 = vld [vmem:[%s2061_s8 + $0x30] sm:$0xff] }
  0x5f   : > { %v407_v10 = vld [vmem:[%s2049_s6 + $0xd8] sm:$0xff]  ;;  %v688_v25 = vunpack.c.0.s8 %v2205_v61  ;;  %v937_v33 = vsub.f32 1.0, %v809_v3 }
  0x60   : > { %490 = vperm.xlu1 %1644, %v395_v54   ;;  %485 = vperm.xlu0 %1643, %v394_v55   ;;  %v1650_v54 = vpop.eup %1649  ;;  %3006 = vst [vmem:[#allocation14_spill] sm:$0xff] %v2164_v62  ;;  %v1316_v12 = vadd.f32 %v1315_v52, %v2164_v62  ;;  %v2199_v52 = vcvt.s32.f32 %v682_v17  ;;  %v2219_v17 = vld [vmem:[%s2061_s8 + $0x38] sm:$0xff] }
  0x61   : > { %v1652_v4 = vpop.eup %1651 }
  0x62   : > { %v1654_v14 = vpop.eup %1653  ;;  %v2185_v30 = vmul.f32 0.6931472, %v1652_v4  ;;  %v1317_v34 = vadd.f32 %v1316_v12, %v2179_v19  ;;  %3011 = vst [vmem:[#allocation19_spill] sm:$0xff] %v2199_v52  ;;  %v686_v4 = vunpack.c.3.s8 %v2148_v44 }
  0x63   : > { %v1656_v22 = vpop.eup %1655  ;;  %v2193_v41 = vmul.f32 0.6931472, %v1654_v14 }
  0x64   : > { %500 = vperm.xlu1 %1644, %v397_v7   ;;  %495 = vperm.xlu0 %1643, %v396_v8   ;;  %v993_v7 = vadd.f32 1e-06, %v929_v49  ;;  %v403_v8 = vld [vmem:[%s2049_s6 + $0xb8] sm:$0xff]  ;;  %v685_v49 = vunpack.c.2.s8 %v2151_v45  ;;  %v1658_v50 = vpop.eup %1657 }
  0x65   : > { %v1660_v57 = vpop.eup %1659  ;;  %v2221_v44 = vmul.f32 0.6931472, %v1658_v50 }
  0x66   : > { %1667 = vlog2.f32 %v993_v7  ;;  %v2209_v7 = vcvt.s32.f32 %v684_v47  ;;  %v2216_v14 = vcvt.s32.f32 %v685_v49  ;;  %v689_v47 = vunpack.c.0.s8 %v2219_v17 }
  0x68   : > { %510 = vperm.xlu1 %1644, %v399_v23   ;;  %505 = vperm.xlu0 %1643, %v398_v24   ;;  %v2183_v23 = vmul.f32 0.6931472, %v1650_v54  ;;  %v998_v24 = vadd.f32 1e-06, %v934_v0  ;;  %v808_v54 = vld [vmem:[%s2035_s26 + $0x80] sm:$0xff]  ;;  %v1662_v0 = vpop.eup %1661  ;;  %3013 = vst [vmem:[#allocation21_spill] sm:$0xff] %v2209_v7 }
  0x69   : > { %v936_v12 = vsub.f32 1.0, %v808_v54  ;;  %3014 = vst [vmem:[#allocation22_spill] sm:$0xff] %v2216_v14  ;;  %v1664_v18 = vpop.eup %1663  ;;  %v2234_v50 = vmul.f32 0.6931472, %v1662_v0  ;;  %v2236_v54 = vcvt.s32.f32 %v687_v13  ;;  %v1001_v0 = vadd.f32 1e-06, %v937_v33 }
  0x6a   : > { %1669 = vlog2.f32 %v998_v24  ;;  %v1666_v49 = vpop.eup %1665  ;;  %v2249_v13 = vmul.f32 0.6931472, %v1664_v18 }
  0x6b   : > { %1671 = vlog2.f32 %v999_v46  ;;  %v2231_v46 = vcvt.s32.f32 %v686_v4  ;;  %3016 = vst [vmem:[#allocation24_spill] sm:$0xff] %v2234_v50  ;;  %3017 = vst [vmem:[#allocation25_spill] sm:$0xff] %v2236_v54  ;;  %v837_v50 = vld [vmem:[%s2035_s26 + $0x168] sm:$0xff] }
  0x6c   : > { %520 = vperm.xlu1 %1644, %v401_v37   ;;  %515 = vperm.xlu0 %1643, %v400_v51   ;;  %v2197_v37 = vmul.f32 0.6931472, %v1656_v22  ;;  %v996_v51 = vadd.f32 1e-06, %v932_v11  ;;  %v406_v11 = vld [vmem:[%s2049_s6 + $0xd0] sm:$0xff]  ;;  %3020 = vst [vmem:[#allocation28_spill] sm:$0xff] %v2249_v13 }
  0x6d   : > { %v814_v22 = vld [vmem:[%s2035_s26 + $0xb0] sm:$0xff]  ;;  %3015 = vst [vmem:[#allocation23_spill] sm:$0xff] %v2231_v46 }
  0x6e   : > { %3010 = vst [vmem:[#allocation18_spill] sm:$0xff] %v2197_v37  ;;  %1673 = vlog2.f32 %v996_v51  ;;  %v1000_v51 = vadd.f32 1e-06, %v936_v12  ;;  %v942_v59 = vsub.f32 1.0, %v814_v22  ;;  %v411_v12 = vld [vmem:[%s2049_s6 + $0xf8] sm:$0xff] }
  0x6f   : > { %1675 = vlog2.f32 %v997_v58  ;;  %v815_v58 = vld [vmem:[%s2035_s26 + $0xb8] sm:$0xff] }
  0x70   : > { %530 = vperm.xlu1 %1644, %v403_v8   ;;  %525 = vperm.xlu0 %1643, %v402_v9   ;;  %v1318_v8 = vadd.f32 %v1317_v34, %v2199_v52  ;;  %v1349_v9 = vadd.f32 %v1348_v35, %v2201_v53  ;;  %v409_v34 = vld [vmem:[%s2049_s6 + $0xe8] sm:$0xff]  ;;  %v408_v35 = vld [vmem:[%s2049_s6 + $0xe0] sm:$0xff]  ;;  %v1668_v3 = vpop.eup %1667  ;;  %1677 = vlog2.f32 %v1002_v31  ;;  %v943_v22 = vsub.f32 1.0, %v815_v58 }
  0x71   : > { %v2254_v31 = vmul.f32 0.6931472, %v1666_v49  ;;  %v2256_v33 = vmul.f32 0.6931472, %v1668_v3  ;;  %v692_v49 = vunpack.c.2.s8 %v2205_v61  ;;  %v693_v3 = vunpack.c.2.s8 %v2219_v17 }
  0x72   : > { %v1319_v24 = vadd.f32 %v1318_v8, %v2209_v7  ;;  %v1350_v45 = vadd.f32 %v1349_v9, %v2216_v14  ;;  %v2241_v8 = vcvt.s32.f32 %v688_v25  ;;  %v812_v9 = vld [vmem:[%s2035_s26 + $0xa0] sm:$0xff]  ;;  %v813_v25 = vld [vmem:[%s2035_s26 + $0xa8] sm:$0xff]  ;;  %v695_v14 = vunpack.c.3.s8 %v2219_v17 }
  0x73   : > { %3021 = vst [vmem:[#allocation29_spill] sm:$0xff] %v2254_v31  ;;  %3022 = vst [vmem:[#allocation30_spill] sm:$0xff] %v2256_v33  ;;  %v2273_v7 = vcvt.s32.f32 %v692_v49  ;;  %v2492_v33 = vld [vmem:[%s2061_s8 + $0x70] sm:$0xff] }
  0x74   : > { %540 = vperm.xlu1 %1644, %v405_v38   ;;  %535 = vperm.xlu0 %1643, %v404_v39   ;;  %v2229_v38 = vmul.f32 0.6931472, %v1660_v57  ;;  %v1003_v39 = vadd.f32 1e-06, %v939_v60  ;;  %v690_v57 = vunpack.c.1.s8 %v2205_v61  ;;  %v691_v60 = vunpack.c.1.s8 %v2219_v17  ;;  %3018 = vst [vmem:[#allocation26_spill] sm:$0xff] %v2241_v8  ;;  %v1670_v36 = vpop.eup %1669  ;;  %v2288_v17 = vld [vmem:[%s2061_s8 + $0x48] sm:$0xff] }
  0x75   : > { %v1320_v4 = vadd.f32 %v1319_v24, %v2231_v46  ;;  %v410_v24 = vld [vmem:[%s2049_s6 + $0xf0] sm:$0xff]  ;;  %v1672_v58 = vpop.eup %1671  ;;  %3025 = vst [vmem:[#allocation33_spill] sm:$0xff] %v2273_v7  ;;  %v821_v46 = vld [vmem:[%s2035_s26 + $0xe8] sm:$0xff]  ;;  %s2883_s6 = scalar_lea.hbm %s2940_s4, %s1575_s10 }
  0x76   : > { %1679 = vlog2.f32 %v1003_v39  ;;  %v2260_v18 = vcvt.s32.f32 %v690_v57  ;;  %v2262_v39 = vcvt.s32.f32 %v691_v60  ;;  %v949_v53 = vsub.f32 1.0, %v821_v46 }
  0x77   : > { %v1321_v55 = vadd.f32 %v1320_v4, %v2241_v8  ;;  %1681 = vlog2.f32 %v1000_v51  ;;  %v941_v4 = vsub.f32 1.0, %v813_v25  ;;  %v1007_v8 = vadd.f32 1e-06, %v943_v22 }
  0x78   : > { %550 = vperm.xlu1 %1644, %v407_v10   ;;  %545 = vperm.xlu0 %1643, %v406_v11   ;;  %v2245_v10 = vcvt.s32.f32 %v689_v47  ;;  %v1351_v11 = vadd.f32 %v1350_v45, %v2236_v54  ;;  %v818_v47 = vld [vmem:[%s2035_s26 + $0xd0] sm:$0xff]  ;;  %3023 = vst [vmem:[#allocation31_spill] sm:$0xff] %v2260_v18  ;;  %3024 = vst [vmem:[#allocation32_spill] sm:$0xff] %v2262_v39  ;;  %1683 = vlog2.f32 %v1001_v0  ;;  %v1674_v51 = vpop.eup %1673  ;;  %v817_v0 = vld [vmem:[%s2035_s26 + $0xc8] sm:$0xff]  ;;  %v694_v25 = vunpack.c.3.s8 %v2205_v61 }
  0x79   : > { %v1322_v57 = vadd.f32 %v1321_v55, %v2260_v18  ;;  %v2277_v22 = vmul.f32 0.6931472, %v1670_v36  ;;  %v2285_v54 = vld [vmem:[%s2061_s8 + $0x40] sm:$0xff]  ;;  %v2290_v49 = vmul.f32 0.6931472, %v1674_v51 }
  0x7a   : > { %3019 = vst [vmem:[#allocation27_spill] sm:$0xff] %v2245_v10  ;;  %v1352_v45 = vadd.f32 %v1351_v11, %v2245_v10  ;;  %v819_v11 = vld [vmem:[%s2035_s26 + $0xd8] sm:$0xff]  ;;  %v816_v10 = vld [vmem:[%s2035_s26 + $0xc0] sm:$0xff]  ;;  %v696_v51 = vunpack.c.0.s8 %v2285_v54  ;;  %v698_v21 = vunpack.c.1.s8 %v2285_v54 }
  0x7b   : > { %3027 = vst [vmem:[#allocation35_spill] sm:$0xff] %v2277_v22  ;;  %v1323_v18 = vadd.f32 %v1322_v57, %v2273_v7  ;;  %3029 = vst [vmem:[#allocation37_spill] sm:$0xff] %v2290_v49  ;;  %v823_v57 = vld [vmem:[%s2035_s26 + $0xf8] sm:$0xff]  ;;  %v833_v49 = vld [vmem:[%s2035_s26 + $0x148] sm:$0xff] }
  0x7c   : > { %560 = vperm.xlu1 %1644, %v409_v34   ;;  %555 = vperm.xlu0 %1643, %v408_v35   ;;  %v1006_v34 = vadd.f32 1e-06, %v942_v59  ;;  %v940_v35 = vsub.f32 1.0, %v812_v9  ;;  %v946_v59 = vsub.f32 1.0, %v818_v47  ;;  %v1353_v60 = vadd.f32 %v1352_v45, %v2262_v39  ;;  %v1676_v9 = vpop.eup %1675  ;;  %v822_v39 = vld [vmem:[%s2035_s26 + $0xf0] sm:$0xff] }
  0x7d   : > { %v1005_v47 = vadd.f32 1e-06, %v941_v4  ;;  %v947_v45 = vsub.f32 1.0, %v819_v11  ;;  %v2292_v36 = vmul.f32 0.6931472, %v1676_v9  ;;  %v945_v4 = vsub.f32 1.0, %v817_v0 }
  0x7e   : > { %1685 = vlog2.f32 %v1006_v34  ;;  %v1004_v55 = vadd.f32 1e-06, %v940_v35  ;;  %v944_v34 = vsub.f32 1.0, %v816_v10  ;;  %v1678_v35 = vpop.eup %1677  ;;  %v2296_v11 = vcvt.s32.f32 %v695_v14  ;;  %v820_v10 = vld [vmem:[%s2035_s26 + $0xe0] sm:$0xff] }
  0x7f   : > { %3030 = vst [vmem:[#allocation38_spill] sm:$0xff] %v2292_v36  ;;  %1687 = vlog2.f32 %v1007_v8  ;;  %v697_v9 = vunpack.c.0.s8 %v2288_v17  ;;  %v1011_v8 = vadd.f32 1e-06, %v947_v45  ;;  %v1009_v19 = vadd.f32 1e-06, %v945_v4 }
  0x80   : > { %570 = vperm.xlu1 %1644, %v411_v12   ;;  %565 = vperm.xlu0 %1643, %v410_v24   ;;  %v2275_v12 = vcvt.s32.f32 %v693_v3  ;;  %v2279_v24 = vmul.f32 0.6931472, %v1672_v58  ;;  %v1010_v58 = vadd.f32 1e-06, %v946_v59  ;;  %v2294_v3 = vcvt.s32.f32 %v694_v25  ;;  %3032 = vst [vmem:[#allocation40_spill] sm:$0xff] %v2296_v11 }
  0x81   : > { %1689 = vlog2.f32 %v1004_v55  ;;  %v1008_v14 = vadd.f32 1e-06, %v944_v34  ;;  %v951_v25 = vsub.f32 1.0, %v823_v57  ;;  %v2306_v55 = vcvt.s32.f32 %v696_v51 }
  0x82   : > { %3026 = vst [vmem:[#allocation34_spill] sm:$0xff] %v2275_v12  ;;  %3028 = vst [vmem:[#allocation36_spill] sm:$0xff] %v2279_v24  ;;  %v1354_v61 = vadd.f32 %v1353_v60, %v2275_v12  ;;  %v1680_v60 = vpop.eup %1679  ;;  %v950_v12 = vsub.f32 1.0, %v822_v39  ;;  %1691 = vlog2.f32 %v1005_v47  ;;  %v1324_v59 = vadd.f32 %v1323_v18, %v2294_v3  ;;  %v826_v18 = vld [vmem:[%s2035_s26 + $0x110] sm:$0xff] }
  0x83   : > { %3031 = vst [vmem:[#allocation39_spill] sm:$0xff] %v2294_v3  ;;  %v1682_v7 = vpop.eup %1681  ;;  %3033 = vst [vmem:[#allocation41_spill] sm:$0xff] %v2306_v55  ;;  %1693 = vlog2.f32 %v1010_v58  ;;  %v699_v24 = vunpack.c.1.s8 %v2288_v17  ;;  %v2309_v47 = vcvt.s32.f32 %v697_v9  ;;  %v948_v22 = vsub.f32 1.0, %v820_v10  ;;  %v827_v9 = vld [vmem:[%s2035_s26 + $0x118] sm:$0xff]  ;;  %v824_v10 = vld [vmem:[%s2035_s26 + $0x100] sm:$0xff] }
  0x84   : > { %v1355_v0 = vadd.f32 %v1354_v61, %v2296_v11  ;;  %v1684_v39 = vpop.eup %1683  ;;  %v1014_v45 = vadd.f32 1e-06, %v950_v12  ;;  %v1325_v61 = vadd.f32 %v1324_v59, %v2306_v55  ;;  %v2313_v34 = vmul.f32 0.6931472, %v1678_v35  ;;  %v2338_v11 = vld [vmem:[%s2061_s8 + $0x50] sm:$0xff] }
  0x85   : > { %3034 = vst [vmem:[#allocation42_spill] sm:$0xff] %v2309_v47  ;;  %1695 = vlog2.f32 %v1011_v8  ;;  %v700_v58 = vunpack.c.2.s8 %v2285_v54  ;;  %v2319_v51 = vmul.f32 0.6931472, %v1680_v60  ;;  %v1015_v12 = vadd.f32 1e-06, %v951_v25  ;;  %v825_v60 = vld [vmem:[%s2035_s26 + $0x108] sm:$0xff] }
  0x86   : > { %3035 = vst [vmem:[#allocation43_spill] sm:$0xff] %v2313_v34  ;;  %v1356_v57 = vadd.f32 %v1355_v0, %v2309_v47  ;;  %1697 = vlog2.f32 %v1008_v14  ;;  %v2321_v46 = vcvt.s32.f32 %v698_v21  ;;  %v2324_v35 = vcvt.s32.f32 %v699_v24  ;;  %v830_v14 = vld [vmem:[%s2035_s26 + $0x130] sm:$0xff] }
  0x87   : > { %3036 = vst [vmem:[#allocation44_spill] sm:$0xff] %v2319_v51  ;;  %1699 = vlog2.f32 %v1009_v19  ;;  %v954_v8 = vsub.f32 1.0, %v826_v18  ;;  %v701_v59 = vunpack.c.2.s8 %v2288_v17  ;;  %v1012_v47 = vadd.f32 1e-06, %v948_v22 }
  0x88   : > { %v2317_v4 = vpop.eup %1685  ;;  %3037 = vst [vmem:[#allocation45_spill] sm:$0xff] %v2321_v46  ;;  %3038 = vst [vmem:[#allocation46_spill] sm:$0xff] %v2324_v35  ;;  %1701 = vlog2.f32 %v1014_v45  ;;  %v1013_v55 = vadd.f32 1e-06, %v949_v53  ;;  %v1326_v21 = vadd.f32 %v1325_v61, %v2321_v46  ;;  %v955_v25 = vsub.f32 1.0, %v827_v9 }
  0x89   : > { %v2328_v0 = vpop.eup %1687  ;;  %v702_v19 = vunpack.c.3.s8 %v2285_v54  ;;  %v2334_v24 = vcvt.s32.f32 %v700_v58  ;;  %v1357_v18 = vadd.f32 %v1356_v57, %v2324_v35  ;;  %1703 = vlog2.f32 %v1015_v12  ;;  %v831_v54 = vld [vmem:[%s2035_s26 + $0x138] sm:$0xff] }
  0x8a   : > { %v952_v22 = vsub.f32 1.0, %v824_v10  ;;  %v703_v53 = vunpack.c.3.s8 %v2288_v17  ;;  %v2343_v45 = vcvt.s32.f32 %v701_v59  ;;  %v1018_v61 = vadd.f32 1e-06, %v954_v8  ;;  %v2350_v35 = vld [vmem:[%s2061_s8 + $0x58] sm:$0xff] }
  0x8b   : > { %3039 = vst [vmem:[#allocation47_spill] sm:$0xff] %v2334_v24  ;;  %v2340_v3 = vpop.eup %1689  ;;  %v953_v9 = vsub.f32 1.0, %v825_v60  ;;  %v958_v58 = vsub.f32 1.0, %v830_v14  ;;  %v1327_v57 = vadd.f32 %v1326_v21, %v2334_v24  ;;  %v2352_v46 = vmul.f32 0.6931472, %v1682_v7  ;;  %v828_v14 = vld [vmem:[%s2035_s26 + $0x120] sm:$0xff] }
  0x8c   : > { %3040 = vst [vmem:[#allocation48_spill] sm:$0xff] %v2343_v45  ;;  %v2345_v51 = vpop.eup %1691  ;;  %1705 = vlog2.f32 %v1012_v47  ;;  %v1358_v12 = vadd.f32 %v1357_v18, %v2343_v45  ;;  %v704_v17 = vunpack.c.0.s8 %v2338_v11  ;;  %v2358_v59 = vmul.f32 0.6931472, %v1684_v39  ;;  %v829_v47 = vld [vmem:[%s2035_s26 + $0x128] sm:$0xff] }
  0x8d   : > { %3041 = vst [vmem:[#allocation49_spill] sm:$0xff] %v2352_v46  ;;  %v2356_v10 = vpop.eup %1693  ;;  %1707 = vlog2.f32 %v1013_v55  ;;  %v1019_v8 = vadd.f32 1e-06, %v955_v25  ;;  %v2360_v60 = vcvt.s32.f32 %v702_v19  ;;  %v1016_v21 = vadd.f32 1e-06, %v952_v22 }
  0x8e   : > { %3042 = vst [vmem:[#allocation50_spill] sm:$0xff] %v2358_v59  ;;  %v2363_v24 = vcvt.s32.f32 %v703_v53  ;;  %v959_v7 = vsub.f32 1.0, %v831_v54  ;;  %v705_v18 = vunpack.c.0.s8 %v2350_v35  ;;  %1709 = vlog2.f32 %v1018_v61  ;;  %v834_v59 = vld [vmem:[%s2035_s26 + $0x150] sm:$0xff]  ;;  %v835_v53 = vld [vmem:[%s2035_s26 + $0x158] sm:$0xff] }
  0x8f   : > { %3043 = vst [vmem:[#allocation51_spill] sm:$0xff] %v2360_v60  ;;  %v2367_v45 = vpop.eup %1695  ;;  %v1017_v46 = vadd.f32 1e-06, %v953_v9  ;;  %v1022_v39 = vadd.f32 1e-06, %v958_v58  ;;  %v1328_v55 = vadd.f32 %v1327_v57, %v2360_v60  ;;  %v956_v19 = vsub.f32 1.0, %v828_v14 }
  0x90   : > { %3044 = vst [vmem:[#allocation52_spill] sm:$0xff] %v2363_v24  ;;  %v2371_v25 = vpop.eup %1697  ;;  %v706_v22 = vunpack.c.1.s8 %v2338_v11  ;;  %v2375_v54 = vcvt.s32.f32 %v704_v17  ;;  %v1359_v34 = vadd.f32 %v1358_v12, %v2363_v24  ;;  %1711 = vlog2.f32 %v1019_v8  ;;  %v832_v57 = vld [vmem:[%s2035_s26 + $0x140] sm:$0xff] }
  0x91   : > { %v2378_v52 = vpop.eup %1699  ;;  %v957_v61 = vsub.f32 1.0, %v829_v47  ;;  %v707_v9 = vunpack.c.1.s8 %v2350_v35  ;;  %v2381_v58 = vcvt.s32.f32 %v705_v18  ;;  %1713 = vlog2.f32 %v1016_v21 }
  0x92   : > { %3045 = vst [vmem:[#allocation53_spill] sm:$0xff] %v2375_v54  ;;  %v2384_v60 = vpop.eup %1701  ;;  %v1023_v14 = vadd.f32 1e-06, %v959_v7  ;;  %v962_v36 = vsub.f32 1.0, %v834_v59  ;;  %v1329_v17 = vadd.f32 %v1328_v55, %v2375_v54  ;;  %1715 = vlog2.f32 %v1017_v46 }
  0x93   : > { %3046 = vst [vmem:[#allocation54_spill] sm:$0xff] %v2381_v58  ;;  %v963_v13 = vsub.f32 1.0, %v835_v53  ;;  %v1360_v12 = vadd.f32 %v1359_v34, %v2381_v58  ;;  %v708_v8 = vunpack.c.2.s8 %v2338_v11  ;;  %v2390_v47 = vpop.eup %1703  ;;  %1717 = vlog2.f32 %v1022_v39 }
  0x94   : > { %v1020_v18 = vadd.f32 1e-06, %v956_v19  ;;  %v2392_v24 = vcvt.s32.f32 %v706_v22  ;;  %v960_v21 = vsub.f32 1.0, %v832_v57  ;;  %v1021_v7 = vadd.f32 1e-06, %v957_v61  ;;  %v838_v19 = vld [vmem:[%s2035_s26 + $0x170] sm:$0xff] }
  0x95   : > { %v2394_v59 = vcvt.s32.f32 %v707_v9  ;;  %v961_v55 = vsub.f32 1.0, %v833_v49  ;;  %v709_v46 = vunpack.c.2.s8 %v2350_v35  ;;  %v2400_v34 = vmul.f32 0.6931472, %v2317_v4  ;;  %v839_v49 = vld [vmem:[%s2035_s26 + $0x178] sm:$0xff]  ;;  %v2412_v4 = vld [vmem:[%s2061_s8 + $0x60] sm:$0xff] }
  0x96   : > { %3047 = vst [vmem:[#allocation55_spill] sm:$0xff] %v2392_v24  ;;  %v2397_v53 = vpop.eup %1705  ;;  %1719 = vlog2.f32 %v1023_v14  ;;  %v1026_v39 = vadd.f32 1e-06, %v962_v36  ;;  %v1330_v22 = vadd.f32 %v1329_v17, %v2392_v24  ;;  %v1027_v61 = vadd.f32 1e-06, %v963_v13  ;;  %v836_v17 = vld [vmem:[%s2035_s26 + $0x160] sm:$0xff] }
  0x97   : > { %3048 = vst [vmem:[#allocation56_spill] sm:$0xff] %v2394_v59  ;;  %3049 = vst [vmem:[#allocation57_spill] sm:$0xff] %v2400_v34  ;;  %v2404_v58 = vpop.eup %1707  ;;  %v710_v9 = vunpack.c.3.s8 %v2338_v11  ;;  %v2408_v57 = vcvt.s32.f32 %v708_v8  ;;  %v1361_v54 = vadd.f32 %v1360_v12, %v2394_v59  ;;  %1721 = vlog2.f32 %v1020_v18 }
  0x98   : > { %v1024_v14 = vadd.f32 1e-06, %v960_v21  ;;  %v711_v36 = vunpack.c.3.s8 %v2350_v35  ;;  %v2415_v34 = vcvt.s32.f32 %v709_v46  ;;  %v2418_v24 = vpop.eup %1709  ;;  %1723 = vlog2.f32 %v1021_v7 }
  0x99   : > { %3050 = vst [vmem:[#allocation58_spill] sm:$0xff] %v2408_v57  ;;  %v1025_v13 = vadd.f32 1e-06, %v961_v55  ;;  %v966_v11 = vsub.f32 1.0, %v838_v19  ;;  %v1331_v8 = vadd.f32 %v1330_v22, %v2408_v57  ;;  %1725 = vlog2.f32 %v1026_v39 }
  0x9a   : > { %3051 = vst [vmem:[#allocation59_spill] sm:$0xff] %v2415_v34  ;;  %v967_v12 = vsub.f32 1.0, %v839_v49  ;;  %v1362_v18 = vadd.f32 %v1361_v54, %v2415_v34  ;;  %v712_v35 = vunpack.c.0.s8 %v2412_v4  ;;  %v2427_v21 = vpop.eup %1711  ;;  %v2430_v7 = vmul.f32 0.6931472, %v2328_v0  ;;  %v842_v54 = vld [vmem:[%s2035_s26 + $0x190] sm:$0xff] }
  0x9b   : > { %1727 = vlog2.f32 %v1027_v61  ;;  %v2432_v55 = vcvt.s32.f32 %v710_v9  ;;  %v964_v46 = vsub.f32 1.0, %v836_v17  ;;  %v2434_v19 = vpop.eup %1713  ;;  %v2436_v39 = vcvt.s32.f32 %v711_v36  ;;  %v843_v61 = vld [vmem:[%s2035_s26 + $0x198] sm:$0xff]  ;;  %v840_v9 = vld [vmem:[%s2035_s26 + $0x180] sm:$0xff] }
  0x9c   : > { %3052 = vst [vmem:[#allocation60_spill] sm:$0xff] %v2430_v7  ;;  %1729 = vlog2.f32 %v1024_v14  ;;  %v965_v22 = vsub.f32 1.0, %v837_v50  ;;  %v713_v49 = vunpack.c.0.s8 %v2423_v43  ;;  %v2440_v34 = vpop.eup %1715  ;;  %v2443_v57 = vmul.f32 0.6931472, %v2340_v3 }
  0x9d   : > { %3053 = vst [vmem:[#allocation61_spill] sm:$0xff] %v2432_v55  ;;  %3054 = vst [vmem:[#allocation62_spill] sm:$0xff] %v2436_v39  ;;  %1731 = vlog2.f32 %v1025_v13  ;;  %v1030_v0 = vadd.f32 1e-06, %v966_v11  ;;  %v1332_v17 = vadd.f32 %v1331_v8, %v2432_v55  ;;  %v2448_v59 = vpop.eup %1717  ;;  %v1031_v14 = vadd.f32 1e-06, %v967_v12 }
  0x9e   : > { %3055 = vst [vmem:[#allocation63_spill] sm:$0xff] %v2443_v57  ;;  %v714_v50 = vunpack.c.1.s8 %v2412_v4  ;;  %v2451_v36 = vcvt.s32.f32 %v712_v35  ;;  %v1363_v7 = vadd.f32 %v1362_v18, %v2436_v39  ;;  %v1028_v42 = vadd.f32 1e-06, %v964_v46  ;;  %v841_v13 = vld [vmem:[%s2035_s26 + $0x188] sm:$0xff] }
  0x9f   : > { %v970_v3 = vsub.f32 1.0, %v842_v54  ;;  %v2455_v57 = vcvt.s32.f32 %v713_v49  ;;  %v1029_v8 = vadd.f32 1e-06, %v965_v22  ;;  %v971_v55 = vsub.f32 1.0, %v843_v61  ;;  %v845_v39 = vld [vmem:[%s2035_s26 + $0x1a8] sm:$0xff] }
  0xa0   : > { %3056 = vst [vmem:[#allocation64_spill] sm:$0xff] %v2451_v36  ;;  %v2458_v11 = vpop.eup %1719  ;;  %v968_v62 = vsub.f32 1.0, %v840_v9  ;;  %v1333_v12 = vadd.f32 %v1332_v17, %v2451_v36  ;;  %v2462_v35 = vmul.f32 0.6931472, %v2345_v51  ;;  %1733 = vlog2.f32 %v1030_v0  ;;  %v846_v9 = vld [vmem:[%s2035_s26 + $0x1b0] sm:$0xff]  ;;  %v847_v0 = vld [vmem:[%s2035_s26 + $0x1b8] sm:$0xff] }
  0xa1   : > { %3057 = vst [vmem:[#allocation65_spill] sm:$0xff] %v2455_v57  ;;  %v1364_v18 = vadd.f32 %v1363_v7, %v2455_v57  ;;  %v716_v46 = vunpack.c.2.s8 %v2412_v4  ;;  %v2466_v54 = vpop.eup %1721  ;;  %v2469_v49 = vmul.f32 0.6931472, %v2356_v10  ;;  %1735 = vlog2.f32 %v1031_v14 }
  0xa2   : > { %3058 = vst [vmem:[#allocation66_spill] sm:$0xff] %v2462_v35  ;;  %v2471_v22 = vcvt.s32.f32 %v714_v50  ;;  %v969_v61 = vsub.f32 1.0, %v841_v13  ;;  %v2474_v17 = vpop.eup %1723  ;;  %1737 = vlog2.f32 %v1028_v42  ;;  %v2476_v51 = vcvt.s32.f32 %v715_v63  ;;  %v844_v50 = vld [vmem:[%s2035_s26 + $0x1a0] sm:$0xff] }
  0xa3   : > { %3059 = vst [vmem:[#allocation67_spill] sm:$0xff] %v2469_v49  ;;  %v1034_v7 = vadd.f32 1e-06, %v970_v3  ;;  %v717_v57 = vunpack.c.2.s8 %v2423_v43  ;;  %v2480_v36 = vpop.eup %1725  ;;  %1739 = vlog2.f32 %v1029_v8  ;;  %v1035_v10 = vadd.f32 1e-06, %v971_v55 }
  0xa4   : > { %3060 = vst [vmem:[#allocation68_spill] sm:$0xff] %v2471_v22  ;;  %3061 = vst [vmem:[#allocation69_spill] sm:$0xff] %v2476_v51  ;;  %v1032_v14 = vadd.f32 1e-06, %v968_v62  ;;  %v1334_v13 = vadd.f32 %v1333_v12, %v2471_v22  ;;  %v718_v42 = vunpack.c.3.s8 %v2412_v4  ;;  %v974_v63 = vsub.f32 1.0, %v846_v9  ;;  %v850_v22 = vld [vmem:[%s2035_s26 + $0x1d0] sm:$0xff] }
  0xa5   : > { %v2485_v49 = vpop.eup %1727  ;;  %v2488_v3 = vcvt.s32.f32 %v716_v46  ;;  %v1365_v35 = vadd.f32 %v1364_v18, %v2476_v51  ;;  %v1033_v55 = vadd.f32 1e-06, %v969_v61  ;;  %v719_v62 = vunpack.c.3.s8 %v2423_v43  ;;  %v2504_v18 = vld [vmem:[%s2061_s8 + $0x78] sm:$0xff]  ;;  %s1809_s8 = scalar_lea.vmem %s1808_s7, 1024 }
  0xa6   : > { %v2494_v8 = vpop.eup %1729  ;;  %v975_v31 = vsub.f32 1.0, %v847_v0  ;;  %v2497_v12 = vcvt.s32.f32 %v717_v57  ;;  %1741 = vlog2.f32 %v1034_v7  ;;  %v972_v4 = vsub.f32 1.0, %v844_v50  ;;  %v851_v0 = vld [vmem:[%s2035_s26 + $0x1d8] sm:$0xff] }
  0xa7   : > { %3062 = vst [vmem:[#allocation70_spill] sm:$0xff] %v2488_v3  ;;  %v2500_v16 = vpop.eup %1731  ;;  %v973_v46 = vsub.f32 1.0, %v845_v39  ;;  %v1335_v9 = vadd.f32 %v1334_v13, %v2488_v3  ;;  %v2507_v51 = vmul.f32 0.6931472, %v2367_v45  ;;  %1743 = vlog2.f32 %v1035_v10 }
  0xa8   : > { %3063 = vst [vmem:[#allocation71_spill] sm:$0xff] %v2497_v12  ;;  %v1366_v43 = vadd.f32 %v1365_v35, %v2497_v12  ;;  %v720_v57 = vunpack.c.0.s8 %v2492_v33  ;;  %1745 = vlog2.f32 %v1032_v14  ;;  %v2511_v61 = vcvt.s32.f32 %v718_v42  ;;  %v848_v12 = vld [vmem:[%s2035_s26 + $0x1c0] sm:$0xff] }
  0xa9   : > { %3064 = vst [vmem:[#allocation72_spill] sm:$0xff] %v2507_v51  ;;  %v1038_v7 = vadd.f32 1e-06, %v974_v63  ;;  %v978_v39 = vsub.f32 1.0, %v850_v22  ;;  %1747 = vlog2.f32 %v1033_v55  ;;  %v2514_v50 = vcvt.s32.f32 %v719_v62 }
  0xaa   : > { %3065 = vst [vmem:[#allocation73_spill] sm:$0xff] %v2511_v61  ;;  %v1039_v13 = vadd.f32 1e-06, %v975_v31  ;;  %v721_v45 = vunpack.c.0.s8 %v2504_v18  ;;  %v2517_v3 = vpop.eup %1733  ;;  %v1036_v10 = vadd.f32 1e-06, %v972_v4  ;;  %v722_v35 = vunpack.c.1.s8 %v2492_v33 }
  0xab   : > { %3066 = vst [vmem:[#allocation74_spill] sm:$0xff] %v2514_v50  ;;  %v1037_v51 = vadd.f32 1e-06, %v973_v46  ;;  %v1336_v14 = vadd.f32 %v1335_v9, %v2511_v61  ;;  %v2523_v42 = vpop.eup %1735  ;;  %v723_v22 = vunpack.c.1.s8 %v2504_v18  ;;  %v979_v63 = vsub.f32 1.0, %v851_v0 }
  0xac   : > { %v2526_v55 = vcvt.s32.f32 %v720_v57  ;;  %v1367_v31 = vadd.f32 %v1366_v43, %v2514_v50  ;;  %v2529_v62 = vpop.eup %1737  ;;  %v2532_v4 = vmul.f32 0.6931472, %v2371_v25  ;;  %1749 = vlog2.f32 %v1038_v7  ;;  %v854_v50 = vld [vmem:[%s2035_s26 + $0x1f0] sm:$0xff] }
  0xad   : > { %v1042_v46 = vadd.f32 1e-06, %v978_v39  ;;  %v2534_v37 = vcvt.s32.f32 %v721_v45  ;;  %v2536_v9 = vpop.eup %1739  ;;  %1751 = vlog2.f32 %v1039_v13  ;;  %v976_v61 = vsub.f32 1.0, %v848_v12 }
  0xae   : > { %3067 = vst [vmem:[#allocation75_spill] sm:$0xff] %v2526_v55  ;;  %3068 = vst [vmem:[#allocation76_spill] sm:$0xff] %v2532_v4  ;;  %v977_v0 = vsub.f32 1.0, %v849_v15  ;;  %v1337_v57 = vadd.f32 %v1336_v14, %v2526_v55  ;;  %v2541_v43 = vmul.f32 0.6931472, %v2378_v52  ;;  %1753 = vlog2.f32 %v1036_v10  ;;  %v855_v15 = vld [vmem:[%s2035_s26 + $0x1f8] sm:$0xff] }
  0xaf   : > { %3069 = vst [vmem:[#allocation77_spill] sm:$0xff] %v2534_v37  ;;  %v1368_v25 = vadd.f32 %v1367_v31, %v2534_v37  ;;  %v724_v7 = vunpack.c.2.s8 %v2492_v33  ;;  %1755 = vlog2.f32 %v1037_v51  ;;  %v2546_v39 = vcvt.s32.f32 %v722_v35 }
  0xb0   : > { %3070 = vst [vmem:[#allocation78_spill] sm:$0xff] %v2541_v43  ;;  %v2548_v45 = vcvt.s32.f32 %v723_v22  ;;  %v1043_v12 = vadd.f32 1e-06, %v979_v63  ;;  %v2551_v13 = vpop.eup %1741  ;;  %1757 = vlog2.f32 %v1042_v46  ;;  %v726_v52 = vunpack.c.3.s8 %v2492_v33 }
  0xb1   : > { %3071 = vst [vmem:[#allocation79_spill] sm:$0xff] %v2546_v39  ;;  %v727_v10 = vunpack.c.3.s8 %v2504_v18  ;;  %v725_v14 = vunpack.c.2.s8 %v2504_v18  ;;  %v2556_v31 = vpop.eup %1743  ;;  %v1040_v51 = vadd.f32 1e-06, %v976_v61  ;;  %v1041_v35 = vadd.f32 1e-06, %v977_v0 }
  0xb2   : > { %3072 = vst [vmem:[#allocation80_spill] sm:$0xff] %v2548_v45  ;;  %v982_v22 = vsub.f32 1.0, %v854_v50  ;;  %v1338_v63 = vadd.f32 %v1337_v57, %v2546_v39  ;;  %v1746_v46 = vpop.eup %1745  ;;  %v983_v37 = vsub.f32 1.0, %v855_v15  ;;  %v2563_v33 = vcvt.s32.f32 %v724_v7  ;;  %v412_v0 = vld [vmem:[%s370_s24] sm:$0x3] }
  0xb3   : > { %v2565_v55 = vcvt.s32.f32 %v725_v14  ;;  %v1369_v18 = vadd.f32 %v1368_v25, %v2548_v45  ;;  %v1748_v43 = vpop.eup %1747  ;;  %v2569_v4 = vmul.f32 0.6931472, %v2384_v60  ;;  %v2572_v61 = vmul.f32 0.6931472, %v2390_v47  ;;  %v852_v15 = vld [vmem:[%s2035_s26 + $0x1e0] sm:$0xff] }
  0xb4   : > { %3073 = vst [vmem:[#allocation81_spill] sm:$0xff] %v2563_v33  ;;  %v2575_v50 = vmul.f32 0.6931472, %v2397_v53  ;;  %1759 = vlog2.f32 %v1043_v12  ;;  %v2577_v57 = vcvt.s32.f32 %v726_v52  ;;  %v2579_v7 = vcvt.s32.f32 %v727_v10  ;;  %v853_v52 = vld [vmem:[%s2035_s26 + $0x1e8] sm:$0xff]  ;;  %s2618_s26 = scalar_lea.vmem [#allocation7], %s1561_s25 }
  0xb5   : > { %3074 = vst [vmem:[#allocation82_spill] sm:$0xff] %v2565_v55  ;;  %v1339_v25 = vadd.f32 %v1338_v63, %v2563_v33  ;;  %v1370_v14 = vadd.f32 %v1369_v18, %v2565_v55  ;;  %v2585_v60 = vmul.f32 0.6931472, %v2404_v58  ;;  %v2588_v47 = vmul.f32 0.6931472, %v2418_v24  ;;  %s1403_s12 = sshll.u32 %s2618_s26, 4  ;;  %s2885_s12 = int_to_ptr.vmem [resolvable:$true] %s1403_s12 }
  0xb6   : > { %3075 = vst [vmem:[#allocation83_spill] sm:$0xff] %v2577_v57  ;;  %3076 = vst [vmem:[#allocation84_spill] sm:$0xff] %v2579_v7  ;;  %1761 = vlog2.f32 %v1040_v51  ;;  %v1046_v53 = vadd.f32 1e-06, %v982_v22  ;;  %v1750_v45 = vpop.eup %1749  ;;  %v1047_v12 = vadd.f32 1e-06, %v983_v37  ;;  %p1810_p13 = scmp.lt.s32.totalorder %s2885_s12, %s1808_s7 }
  0xb7   : > { %1763 = vlog2.f32 %v1041_v35  ;;  %v1340_v10 = vadd.f32 %v1339_v25, %v2577_v57  ;;  %v1371_v39 = vadd.f32 %v1370_v14, %v2579_v7  ;;  %v1752_v63 = vpop.eup %1751  ;;  %v3077_v18 = vsub.s32 0, %v2134_v20  ;;  %s1803_s27 = scalar_lea.vmem %s2885_s12, 512 }
  0xb8   : > { %v2598_v58 = vmul.f32 0.6931472, %v2427_v21  ;;  %v2601_v24 = vmul.f32 0.6931472, %v2434_v19  ;;  %v2604_v51 = vmul.f32 0.6931472, %v2440_v34  ;;  %v1754_v37 = vpop.eup %1753  ;;  %1765 = vlog2.f32 %v1046_v53  ;;  %p1804_p8 = scmp.ne.s32.totalorder %s2885_s12, %s1803_s27  ;;  %p1811_p2 = scmp.lt.s32.totalorder %s1809_s8, %s1803_s27 }
  0xb9   : > { %v2595_v55 = vrot.slane %v412_v0, %v3077_v18  ;;  %v3078_v35 = vsub.s32 1, %v2134_v20  ;;  %v2611_v25 = vmul.f32 0.6931472, %v2448_v59  ;;  %v2614_v14 = vmul.f32 0.6931472, %v2458_v11  ;;  %1385 = vst [vmem:[%s2618_s26 + $0x10] sm:$0xff] %v1340_v10  ;;  %v1756_v34 = vpop.eup %1755 }
  0xba   : > { %v980_v18 = vsub.f32 1.0, %v852_v15  ;;  %1386 = vst [vmem:[%s2618_s26 + $0x18] sm:$0xff] %v1371_v39  ;;  %v2623_v21 = vmul.f32 0.6931472, %v2466_v54  ;;  %v2626_v20 = vmul.f32 0.6931472, %v2474_v17  ;;  %v1758_v19 = vpop.eup %1757  ;;  %1767 = vlog2.f32 %v1047_v12  ;;  %p1805_p0 = pnand %p1804_p8, %p3166_p11  ;;  %p1812_p5 = por %p1811_p2, %p1810_p13 }
  0xbb   : > { %v2608_v22 = vrot.slane %v412_v0, %v3078_v35  ;;  %v981_v59 = vsub.f32 1.0, %v853_v52  ;;  %v2629_v11 = vmul.f32 0.6931472, %v2480_v36  ;;  %v2632_v0 = vmul.f32 0.6931472, %v2485_v49 }
  0xbc   : > { %v2635_v15 = vmul.f32 0.6931472, %v2494_v8  ;;  %v2638_v39 = vmul.f32 0.6931472, %v2500_v16  ;;  %v2641_v54 = vmul.f32 0.6931472, %v2517_v3  ;;  %p1806_p6 = pneg %p1805_p0 }
  0xbd   : > { %v2644_v17 = vmul.f32 0.6931472, %v2523_v42  ;;  %v2647_v36 = vmul.f32 0.6931472, %v2529_v62  ;;  %v2650_v49 = vmul.f32 0.6931472, %v2536_v9 }
  0xbe   : > { %v1044_v8 = vadd.f32 1e-06, %v980_v18  ;;  %v1760_v10 = vpop.eup %1759  ;;  %v2655_v3 = vmul.f32 0.6931472, %v2551_v13  ;;  %v1045_v35 = vadd.f32 1e-06, %v981_v59  ;;  %p1813_p4 = pnand %p1812_p5, %p1806_p6 }
  0xbf   : > { %3079 = vst [vmem:[#allocation85_spill] sm:$0xff] %v2644_v17  ;;  %v2658_v42 = vmul.f32 0.6931472, %v2556_v31  ;;  %v2660_v7 = vmul.f32 0.6931472, %v1746_v46 }
  0xc0   : > { %3080 = vst [vmem:[#allocation86_spill] sm:$0xff] %v2655_v3  ;;  %v2662_v62 = vmul.f32 0.6931472, %v1748_v43  ;;  %v1762_v57 = vpop.eup %1761  ;;  %v2666_v33 = vmul.f32 0.6931472, %v1750_v45  ;;  %1769 = vlog2.f32 %v1044_v8 }
  0xc1   : > { %3081 = vst [vmem:[#allocation87_spill] sm:$0xff] %v2658_v42  ;;  %v2668_v17 = vmul.f32 0.6931472, %v1752_v63  ;;  %v2670_v59 = vmul.f32 0.6931472, %v1754_v37  ;;  %1771 = vlog2.f32 %v1045_v35 }
  0xc2   : > { %3082 = vst [vmem:[#allocation88_spill] sm:$0xff] %v2662_v62  ;;  %v2672_v31 = vmul.f32 0.6931472, %v1756_v34  ;;  %v2674_v46 = vmul.f32 0.6931472, %v1758_v19 }
  0xc3   : > { %v426_v53 = vpop.permute.xlu1 %425  ;;  %v416_v52 = vpop.permute.xlu0 %415  ;;  %v2678_v62 = vmul.f32 0.6931472, %v1760_v10 }
  0xc4   : > { %v584_v12 = vmul.f32 %v2595_v55, %v416_v52  ;;  %v585_v16 = vmul.f32 %v2608_v22, %v416_v52  ;;  %v588_v9 = vmul.f32 %v2595_v55, %v426_v53  ;;  %v589_v18 = vmul.f32 %v2608_v22, %v426_v53  ;;  %v1764_v52 = vpop.eup %1763  ;;  %3083 = vst [vmem:[#allocation89_spill] sm:$0xff] %v2674_v46 }
  0xc5   : > { %3084 = vst [vmem:[#allocation90_spill] sm:$0xff] %v2678_v62  ;;  %v1766_v34 = vpop.eup %1765  ;;  %v2686_v46 = vmul.f32 0.6931472, %v1762_v57 }
  0xc6   : > { %v856_v43 = vmul.f32 %v2074_v26, %v584_v12  ;;  %v857_v42 = vmul.f32 %v2076_v27, %v585_v16  ;;  %v860_v19 = vmul.f32 %v2083_v32, %v588_v9  ;;  %v861_v8 = vmul.f32 %v2097_v40, %v589_v18  ;;  %v1768_v27 = vpop.eup %1767 }
  0xc7   : > { %v431_v13 = vpop.permute.xlu1 %430  ;;  %v421_v3 = vpop.permute.xlu0 %420  ;;  %v2688_v26 = vmul.f32 0.6931472, %v1764_v52  ;;  %v2704_v52 = vmul.f32 0.6931472, %v1766_v34 }
  0xc8   : > { %v590_v45 = vmul.f32 %v2595_v55, %v431_v13  ;;  %v591_v63 = vmul.f32 %v2608_v22, %v431_v13  ;;  %v586_v53 = vmul.f32 %v2595_v55, %v421_v3  ;;  %v587_v37 = vmul.f32 %v2608_v22, %v421_v3 }
  0xc9   : > { %v1176_v9 = vmul.f32 %v2183_v23, %v856_v43 }
  0xca   : > { %v862_v10 = vmul.f32 %v2102_v48, %v590_v45  ;;  %v863_v12 = vmul.f32 %v2109_v56, %v591_v63  ;;  %v858_v16 = vmul.f32 %v2078_v28, %v586_v53  ;;  %v859_v35 = vmul.f32 %v2080_v29, %v587_v37  ;;  %v2714_v34 = vpop.eup %1769 }
  0xcb   : > { %v441_v13 = vpop.permute.xlu1 %440  ;;  %v436_v3 = vpop.permute.xlu0 %435  ;;  %v1177_v48 = vmul.f32 %v2185_v30, %v857_v42  ;;  %v2706_v45 = vmul.f32 0.6931472, %v1768_v27  ;;  %v1180_v63 = vmul.f32 %v2169_v5, %v860_v19  ;;  %v1181_v53 = vmul.f32 %v2171_v6, %v861_v8  ;;  %v3085_v42 = vld [vmem:[#allocation18_spill] sm:$0xff]  ;;  %v3088_v8 = vld [vmem:[#allocation29_spill] sm:$0xff] }
  0xcc   : > { %v594_v62 = vmul.f32 %v2595_v55, %v441_v13  ;;  %v595_v32 = vmul.f32 %v2608_v22, %v441_v13  ;;  %v592_v40 = vmul.f32 %v2595_v55, %v436_v3  ;;  %v593_v57 = vmul.f32 %v2608_v22, %v436_v3  ;;  %v2718_v19 = vpop.eup %1771 }
  0xcd   : > { %v1178_v56 = vmul.f32 %v2221_v44, %v858_v16  ;;  %v1179_v28 = vmul.f32 %v2229_v38, %v859_v35  ;;  %v1182_v44 = vmul.f32 %v2193_v41, %v862_v10  ;;  %v1183_v38 = vmul.f32 %v3085_v42, %v863_v12  ;;  %v3086_v16 = vld [vmem:[#allocation10_spill] sm:$0xff]  ;;  %v3087_v35 = vld [vmem:[#allocation11_spill] sm:$0xff]  ;;  %v3094_v42 = vld [vmem:[#allocation24_spill] sm:$0xff] }
  0xce   : > { %v864_v29 = vmul.f32 %v2117_v1, %v592_v40  ;;  %v865_v18 = vmul.f32 %v2119_v2, %v593_v57  ;;  %v866_v1 = vmul.f32 %v3086_v16, %v594_v62  ;;  %v867_v2 = vmul.f32 %v3087_v35, %v595_v32  ;;  %v3089_v40 = vld [vmem:[#allocation30_spill] sm:$0xff]  ;;  %v3095_v35 = vld [vmem:[#allocation28_spill] sm:$0xff] }
  0xcf   : > { %v1242_v37 = vadd.f32 %v1178_v56, %v1176_v9  ;;  %v1273_v23 = vadd.f32 %v1179_v28, %v1177_v48  ;;  %v451_v43 = vpop.permute.xlu1 %450  ;;  %v446_v30 = vpop.permute.xlu0 %445  ;;  %v3090_v57 = vld [vmem:[#allocation14_spill] sm:$0xff]  ;;  %v3091_v48 = vld [vmem:[#allocation15_spill] sm:$0xff] }
  0xd0   : > { %v598_v5 = vmul.f32 %v2595_v55, %v451_v43  ;;  %v599_v6 = vmul.f32 %v2608_v22, %v451_v43  ;;  %v1184_v3 = vmul.f32 %v3088_v8, %v864_v29  ;;  %v1185_v41 = vmul.f32 %v3089_v40, %v865_v18  ;;  %v3098_v8 = vld [vmem:[#allocation19_spill] sm:$0xff] }
  0xd1   : > { %v1243_v27 = vadd.f32 %v1242_v37, %v1180_v63  ;;  %v1274_v13 = vadd.f32 %v1273_v23, %v1181_v53  ;;  %v596_v10 = vmul.f32 %v2595_v55, %v446_v30  ;;  %v597_v62 = vmul.f32 %v2608_v22, %v446_v30  ;;  %v3092_v53 = vld [vmem:[#allocation12_spill] sm:$0xff]  ;;  %v3093_v23 = vld [vmem:[#allocation13_spill] sm:$0xff] }
  0xd2   : > { %v870_v9 = vmul.f32 %v3090_v57, %v598_v5  ;;  %v871_v56 = vmul.f32 %v3091_v48, %v599_v6  ;;  %v1186_v16 = vmul.f32 %v3094_v42, %v866_v1  ;;  %v1187_v30 = vmul.f32 %v3095_v35, %v867_v2  ;;  %v3097_v5 = vld [vmem:[#allocation38_spill] sm:$0xff]  ;;  %v3099_v57 = vld [vmem:[#allocation20_spill] sm:$0xff]  ;;  %v3100_v42 = vld [vmem:[#allocation35_spill] sm:$0xff] }
  0xd3   : > { %v1244_v12 = vadd.f32 %v1243_v27, %v1182_v44  ;;  %v1275_v32 = vadd.f32 %v1274_v13, %v1183_v38  ;;  %v461_v28 = vpop.permute.xlu1 %460  ;;  %v456_v63 = vpop.permute.xlu0 %455  ;;  %v868_v37 = vmul.f32 %v3092_v53, %v596_v10  ;;  %v869_v43 = vmul.f32 %v3093_v23, %v597_v62  ;;  %v3096_v27 = vld [vmem:[#allocation37_spill] sm:$0xff] }
  0xd4   : > { %v602_v29 = vmul.f32 %v2595_v55, %v461_v28  ;;  %v603_v18 = vmul.f32 %v2608_v22, %v461_v28  ;;  %v600_v53 = vmul.f32 %v2595_v55, %v456_v63  ;;  %v601_v28 = vmul.f32 %v2608_v22, %v456_v63 }
  0xd5   : > { %v1245_v44 = vadd.f32 %v1244_v12, %v1184_v3  ;;  %v1276_v38 = vadd.f32 %v1275_v32, %v1185_v41  ;;  %v1188_v13 = vmul.f32 %v3096_v27, %v868_v37  ;;  %v1189_v6 = vmul.f32 %v3097_v5, %v869_v43  ;;  %v3101_v3 = vld [vmem:[#allocation36_spill] sm:$0xff] }
  0xd6   : > { %v874_v40 = vmul.f32 %v3098_v8, %v602_v29  ;;  %v875_v10 = vmul.f32 %v3099_v57, %v603_v18  ;;  %v1190_v2 = vmul.f32 %v3100_v42, %v870_v9  ;;  %v1191_v41 = vmul.f32 %v3101_v3, %v871_v56  ;;  %v3102_v29 = vld [vmem:[#allocation16_spill] sm:$0xff]  ;;  %v3106_v8 = vld [vmem:[#allocation49_spill] sm:$0xff]  ;;  %v3107_v42 = vld [vmem:[#allocation50_spill] sm:$0xff] }
  0xd7   : > { %v1246_v48 = vadd.f32 %v1245_v44, %v1186_v16  ;;  %v1277_v62 = vadd.f32 %v1276_v38, %v1187_v30  ;;  %v471_v23 = vpop.permute.xlu1 %470  ;;  %v466_v1 = vpop.permute.xlu0 %465  ;;  %v872_v18 = vmul.f32 %v3102_v29, %v600_v53  ;;  %v3103_v16 = vld [vmem:[#allocation17_spill] sm:$0xff]  ;;  %v3104_v30 = vld [vmem:[#allocation43_spill] sm:$0xff]  ;;  %v3105_v38 = vld [vmem:[#allocation44_spill] sm:$0xff] }
  0xd8   : > { %v606_v12 = vmul.f32 %v2595_v55, %v471_v23  ;;  %v607_v32 = vmul.f32 %v2608_v22, %v471_v23  ;;  %v873_v35 = vmul.f32 %v3103_v16, %v601_v28  ;;  %v1194_v44 = vmul.f32 %v3104_v30, %v874_v40  ;;  %v3109_v53 = vld [vmem:[#allocation25_spill] sm:$0xff]  ;;  %v3111_v29 = vld [vmem:[#allocation22_spill] sm:$0xff] }
  0xd9   : > { %v1247_v37 = vadd.f32 %v1246_v48, %v1188_v13  ;;  %v1278_v43 = vadd.f32 %v1277_v62, %v1189_v6  ;;  %v1195_v63 = vmul.f32 %v3105_v38, %v875_v10  ;;  %v604_v27 = vmul.f32 %v2595_v55, %v466_v1  ;;  %v3108_v48 = vld [vmem:[#allocation23_spill] sm:$0xff]  ;;  %v3110_v3 = vld [vmem:[#allocation21_spill] sm:$0xff] }
  0xda   : > { %v605_v9 = vmul.f32 %v2608_v22, %v466_v1  ;;  %v1192_v57 = vmul.f32 %v3106_v8, %v872_v18  ;;  %v1193_v23 = vmul.f32 %v3107_v42, %v873_v35  ;;  %v878_v62 = vmul.f32 %v3108_v48, %v606_v12  ;;  %v3114_v8 = vld [vmem:[#allocation31_spill] sm:$0xff]  ;;  %v3115_v42 = vld [vmem:[#allocation32_spill] sm:$0xff] }
  0xdb   : > { %v1248_v5 = vadd.f32 %v1247_v37, %v1190_v2  ;;  %v1279_v56 = vadd.f32 %v1278_v43, %v1191_v41  ;;  %v481_v13 = vpop.permute.xlu1 %480  ;;  %v476_v6 = vpop.permute.xlu0 %475  ;;  %v879_v28 = vmul.f32 %v3109_v53, %v607_v32  ;;  %v876_v40 = vmul.f32 %v3110_v3, %v604_v27  ;;  %v3112_v41 = vld [vmem:[#allocation63_spill] sm:$0xff]  ;;  %v3113_v43 = vld [vmem:[#allocation66_spill] sm:$0xff] }
  0xdc   : > { %v877_v10 = vmul.f32 %v3111_v29, %v605_v9  ;;  %v610_v1 = vmul.f32 %v2595_v55, %v481_v13  ;;  %v611_v2 = vmul.f32 %v2608_v22, %v481_v13  ;;  %v608_v35 = vmul.f32 %v2595_v55, %v476_v6  ;;  %v3117_v48 = vld [vmem:[#allocation27_spill] sm:$0xff] }
  0xdd   : > { %v1249_v16 = vadd.f32 %v1248_v5, %v1192_v57  ;;  %v1280_v30 = vadd.f32 %v1279_v56, %v1193_v23  ;;  %v1196_v37 = vmul.f32 %v3112_v41, %v876_v40  ;;  %v609_v12 = vmul.f32 %v2608_v22, %v476_v6  ;;  %v3116_v57 = vld [vmem:[#allocation26_spill] sm:$0xff]  ;;  %v3118_v40 = vld [vmem:[#allocation57_spill] sm:$0xff]  ;;  %v3122_v41 = vld [vmem:[#allocation39_spill] sm:$0xff] }
  0xde   : > { %v1197_v18 = vmul.f32 %v3113_v43, %v877_v10  ;;  %v882_v27 = vmul.f32 %v3114_v8, %v610_v1  ;;  %v883_v9 = vmul.f32 %v3115_v42, %v611_v2  ;;  %v880_v23 = vmul.f32 %v3116_v57, %v608_v35  ;;  %v3119_v10 = vld [vmem:[#allocation60_spill] sm:$0xff]  ;;  %v3121_v1 = vld [vmem:[#allocation78_spill] sm:$0xff] }
  0xdf   : > { %v1250_v38 = vadd.f32 %v1249_v16, %v1194_v44  ;;  %v1281_v32 = vadd.f32 %v1280_v30, %v1195_v63  ;;  %v491_v5 = vpop.permute.xlu1 %490  ;;  %v486_v56 = vpop.permute.xlu0 %485  ;;  %v881_v13 = vmul.f32 %v3117_v48, %v609_v12  ;;  %v1198_v29 = vmul.f32 %v3118_v40, %v878_v62  ;;  %v3120_v16 = vld [vmem:[#allocation76_spill] sm:$0xff]  ;;  %v3124_v40 = vld [vmem:[#allocation67_spill] sm:$0xff] }
  0xe0   : > { %v614_v53 = vmul.f32 %v2595_v55, %v491_v5  ;;  %v615_v3 = vmul.f32 %v2608_v22, %v491_v5  ;;  %v1199_v6 = vmul.f32 %v3119_v10, %v879_v28  ;;  %v1200_v30 = vmul.f32 %v3120_v16, %v880_v23  ;;  %v3123_v8 = vld [vmem:[#allocation40_spill] sm:$0xff] }
  0xe1   : > { %v1251_v44 = vadd.f32 %v1250_v38, %v1196_v37  ;;  %v1282_v63 = vadd.f32 %v1281_v32, %v1197_v18  ;;  %v1201_v2 = vmul.f32 %v3121_v1, %v881_v13  ;;  %v612_v57 = vmul.f32 %v2595_v55, %v486_v56  ;;  %v3125_v37 = vld [vmem:[#allocation72_spill] sm:$0xff] }
  0xe2   : > { %v886_v43 = vmul.f32 %v3122_v41, %v614_v53  ;;  %v887_v35 = vmul.f32 %v3123_v8, %v615_v3  ;;  %v613_v5 = vmul.f32 %v2608_v22, %v486_v56  ;;  %v1202_v28 = vmul.f32 %v3124_v40, %v882_v27  ;;  %v3126_v53 = vld [vmem:[#allocation33_spill] sm:$0xff] }
  0xe3   : > { %v1252_v42 = vadd.f32 %v1251_v44, %v1198_v29  ;;  %v1283_v12 = vadd.f32 %v1282_v63, %v1199_v6  ;;  %v501_v48 = vpop.permute.xlu1 %500  ;;  %v496_v62 = vpop.permute.xlu0 %495  ;;  %v1203_v18 = vmul.f32 %v3125_v37, %v883_v9  ;;  %v884_v3 = vmul.f32 %v3126_v53, %v612_v57  ;;  %v3127_v29 = vld [vmem:[#allocation34_spill] sm:$0xff]  ;;  %v3128_v41 = vld [vmem:[#allocation45_spill] sm:$0xff] }
  0xe4   : > { %v618_v38 = vmul.f32 %v2595_v55, %v501_v48  ;;  %v619_v32 = vmul.f32 %v2608_v22, %v501_v48  ;;  %v885_v10 = vmul.f32 %v3127_v29, %v613_v5  ;;  %v1206_v6 = vmul.f32 %v2569_v4, %v886_v43  ;;  %v3130_v57 = vld [vmem:[#allocation41_spill] sm:$0xff]  ;;  %v3131_v43 = vld [vmem:[#allocation42_spill] sm:$0xff]  ;;  %v3134_v29 = vld [vmem:[#allocation47_spill] sm:$0xff] }
  0xe5   : > { %v1253_v23 = vadd.f32 %v1252_v42, %v1200_v30  ;;  %v1284_v13 = vadd.f32 %v1283_v12, %v1201_v2  ;;  %v1207_v56 = vmul.f32 %v2572_v61, %v887_v35  ;;  %v616_v44 = vmul.f32 %v2595_v55, %v496_v62  ;;  %v3129_v42 = vld [vmem:[#allocation46_spill] sm:$0xff] }
  0xe6   : > { %v617_v27 = vmul.f32 %v2608_v22, %v496_v62  ;;  %v1204_v16 = vmul.f32 %v2575_v50, %v884_v3  ;;  %v1205_v1 = vmul.f32 %v2585_v60, %v885_v10  ;;  %v890_v8 = vmul.f32 %v3128_v41, %v618_v38  ;;  %v3132_v38 = vld [vmem:[#allocation51_spill] sm:$0xff]  ;;  %v3137_v41 = vld [vmem:[#allocation56_spill] sm:$0xff] }
  0xe7   : > { %v1254_v63 = vadd.f32 %v1253_v23, %v1202_v28  ;;  %v1285_v9 = vadd.f32 %v1284_v13, %v1203_v18  ;;  %v511_v30 = vpop.permute.xlu1 %510  ;;  %v506_v2 = vpop.permute.xlu0 %505  ;;  %v891_v12 = vmul.f32 %v3129_v42, %v619_v32  ;;  %v888_v4 = vmul.f32 %v3130_v57, %v616_v44  ;;  %v3133_v23 = vld [vmem:[#allocation52_spill] sm:$0xff] }
  0xe8   : > { %v889_v61 = vmul.f32 %v3131_v43, %v617_v27  ;;  %v622_v48 = vmul.f32 %v2595_v55, %v511_v30  ;;  %v623_v62 = vmul.f32 %v2608_v22, %v511_v30  ;;  %v620_v40 = vmul.f32 %v2595_v55, %v506_v2  ;;  %v3135_v44 = vld [vmem:[#allocation48_spill] sm:$0xff]  ;;  %v3136_v30 = vld [vmem:[#allocation55_spill] sm:$0xff] }
  0xe9   : > { %v1255_v35 = vadd.f32 %v1254_v63, %v1204_v16  ;;  %v1286_v5 = vadd.f32 %v1285_v9, %v1205_v1  ;;  %v1208_v50 = vmul.f32 %v2601_v24, %v888_v4  ;;  %v621_v28 = vmul.f32 %v2608_v22, %v506_v2 }
  0xea   : > { %v1209_v60 = vmul.f32 %v2604_v51, %v889_v61  ;;  %v894_v32 = vmul.f32 %v3132_v38, %v622_v48  ;;  %v895_v13 = vmul.f32 %v3133_v23, %v623_v62  ;;  %v892_v10 = vmul.f32 %v3134_v29, %v620_v40  ;;  %v3138_v48 = vld [vmem:[#allocation53_spill] sm:$0xff]  ;;  %v3141_v29 = vld [vmem:[#allocation62_spill] sm:$0xff] }
  0xeb   : > { %v1256_v37 = vadd.f32 %v1255_v35, %v1206_v6  ;;  %v1287_v18 = vadd.f32 %v1286_v5, %v1207_v56  ;;  %v521_v53 = vpop.permute.xlu1 %520  ;;  %v516_v3 = vpop.permute.xlu0 %515  ;;  %v893_v27 = vmul.f32 %v3135_v44, %v621_v28  ;;  %v1210_v63 = vmul.f32 %v2588_v47, %v890_v8  ;;  %v3142_v44 = vld [vmem:[#allocation58_spill] sm:$0xff] }
  0xec   : > { %v626_v24 = vmul.f32 %v2595_v55, %v521_v53  ;;  %v627_v51 = vmul.f32 %v2608_v22, %v521_v53  ;;  %v1211_v9 = vmul.f32 %v2598_v58, %v891_v12  ;;  %v1212_v16 = vmul.f32 %v2623_v21, %v892_v10  ;;  %v3140_v53 = vld [vmem:[#allocation61_spill] sm:$0xff] }
  0xed   : > { %v1257_v6 = vadd.f32 %v1256_v37, %v1208_v50  ;;  %v1288_v56 = vadd.f32 %v1287_v18, %v1209_v60  ;;  %v1213_v1 = vmul.f32 %v2626_v20, %v893_v27  ;;  %v624_v43 = vmul.f32 %v2595_v55, %v516_v3  ;;  %v3139_v50 = vld [vmem:[#allocation54_spill] sm:$0xff]  ;;  %v3143_v27 = vld [vmem:[#allocation59_spill] sm:$0xff] }
  0xee   : > { %v898_v2 = vmul.f32 %v3136_v30, %v626_v24  ;;  %v899_v42 = vmul.f32 %v3137_v41, %v627_v51  ;;  %v625_v61 = vmul.f32 %v2608_v22, %v516_v3  ;;  %v1214_v58 = vmul.f32 %v2611_v25, %v894_v32  ;;  %v3144_v30 = vld [vmem:[#allocation68_spill] sm:$0xff]  ;;  %v3145_v41 = vld [vmem:[#allocation69_spill] sm:$0xff] }
  0xef   : > { %v1258_v57 = vadd.f32 %v1257_v6, %v1210_v63  ;;  %v1289_v4 = vadd.f32 %v1288_v56, %v1211_v9  ;;  %v531_v35 = vpop.permute.xlu1 %530  ;;  %v526_v47 = vpop.permute.xlu0 %525  ;;  %v1215_v8 = vmul.f32 %v2614_v14, %v895_v13  ;;  %v896_v62 = vmul.f32 %v3138_v48, %v624_v43  ;;  %v3146_v43 = vld [vmem:[#allocation64_spill] sm:$0xff] }
  0xf0   : > { %v630_v21 = vmul.f32 %v2595_v55, %v531_v35  ;;  %v631_v20 = vmul.f32 %v2608_v22, %v531_v35  ;;  %v897_v60 = vmul.f32 %v3139_v50, %v625_v61  ;;  %v1218_v40 = vmul.f32 %v2629_v11, %v898_v2  ;;  %v3147_v35 = vld [vmem:[#allocation65_spill] sm:$0xff]  ;;  %v3149_v48 = vld [vmem:[#allocation88_spill] sm:$0xff] }
  0xf1   : > { %v1259_v12 = vadd.f32 %v1258_v57, %v1212_v16  ;;  %v1290_v5 = vadd.f32 %v1289_v4, %v1213_v1  ;;  %v1219_v28 = vmul.f32 %v2632_v0, %v899_v42  ;;  %v628_v37 = vmul.f32 %v2595_v55, %v526_v47  ;;  %v3150_v50 = vld [vmem:[#allocation73_spill] sm:$0xff] }
  0xf2   : > { %v629_v25 = vmul.f32 %v2608_v22, %v526_v47  ;;  %v1216_v38 = vmul.f32 %v2635_v15, %v896_v62  ;;  %v1217_v32 = vmul.f32 %v2638_v39, %v897_v60  ;;  %v902_v3 = vmul.f32 %v3140_v53, %v630_v21 }
  0xf3   : > { %v1260_v18 = vadd.f32 %v1259_v12, %v1214_v58  ;;  %v1291_v14 = vadd.f32 %v1290_v5, %v1215_v8  ;;  %v541_v23 = vpop.permute.xlu1 %540  ;;  %v536_v13 = vpop.permute.xlu0 %535  ;;  %v903_v10 = vmul.f32 %v3141_v29, %v631_v20  ;;  %v900_v11 = vmul.f32 %v3142_v44, %v628_v37  ;;  %v3148_v8 = vld [vmem:[#allocation85_spill] sm:$0xff]  ;;  %v3154_v44 = vld [vmem:[#allocation70_spill] sm:$0xff] }
  0xf4   : > { %v901_v0 = vmul.f32 %v3143_v27, %v629_v25  ;;  %v634_v63 = vmul.f32 %v2595_v55, %v541_v23  ;;  %v635_v9 = vmul.f32 %v2608_v22, %v541_v23  ;;  %v632_v6 = vmul.f32 %v2595_v55, %v536_v13  ;;  %v3155_v27 = vld [vmem:[#allocation71_spill] sm:$0xff] }
  0xf5   : > { %v1261_v24 = vadd.f32 %v1260_v18, %v1216_v38  ;;  %v1292_v51 = vadd.f32 %v1291_v14, %v1217_v32  ;;  %v1220_v15 = vmul.f32 %v2647_v36, %v900_v11  ;;  %v633_v56 = vmul.f32 %v2608_v22, %v536_v13  ;;  %v3152_v32 = vld [vmem:[#allocation86_spill] sm:$0xff]  ;;  %v3153_v13 = vld [vmem:[#allocation87_spill] sm:$0xff] }
  0xf6   : > { %v1221_v39 = vmul.f32 %v2650_v49, %v901_v0  ;;  %v906_v2 = vmul.f32 %v3144_v30, %v634_v63  ;;  %v907_v42 = vmul.f32 %v3145_v41, %v635_v9  ;;  %v904_v61 = vmul.f32 %v3146_v43, %v632_v6  ;;  %v3156_v30 = vld [vmem:[#allocation79_spill] sm:$0xff]  ;;  %v3157_v41 = vld [vmem:[#allocation80_spill] sm:$0xff] }
  0xf7   : > { %v1262_v16 = vadd.f32 %v1261_v24, %v1218_v40  ;;  %v1293_v1 = vadd.f32 %v1292_v51, %v1219_v28  ;;  %v551_v57 = vpop.permute.xlu1 %550  ;;  %v546_v4 = vpop.permute.xlu0 %545  ;;  %v905_v47 = vmul.f32 %v3147_v35, %v633_v56  ;;  %v1222_v58 = vmul.f32 %v2641_v54, %v902_v3  ;;  %v3151_v40 = vld [vmem:[#allocation74_spill] sm:$0xff] }
  0xf8   : > { %v638_v36 = vmul.f32 %v2595_v55, %v551_v57  ;;  %v639_v49 = vmul.f32 %v2608_v22, %v551_v57  ;;  %v1223_v21 = vmul.f32 %v3148_v8, %v903_v10  ;;  %v1224_v5 = vmul.f32 %v2660_v7, %v904_v61  ;;  %v3158_v57 = vld [vmem:[#allocation75_spill] sm:$0xff] }
  0xf9   : > { %v1263_v20 = vadd.f32 %v1262_v16, %v1220_v15  ;;  %v1294_v12 = vadd.f32 %v1293_v1, %v1221_v39  ;;  %v1225_v62 = vmul.f32 %v3149_v48, %v905_v47  ;;  %v636_v18 = vmul.f32 %v2595_v55, %v546_v4  ;;  %v3161_v48 = vld [vmem:[#allocation90_spill] sm:$0xff] }
  0xfa   : > { %v910_v60 = vmul.f32 %v3150_v50, %v638_v36  ;;  %v911_v28 = vmul.f32 %v3151_v40, %v639_v49  ;;  %v637_v14 = vmul.f32 %v2608_v22, %v546_v4  ;;  %v1226_v23 = vmul.f32 %v3152_v32, %v906_v2  ;;  %v3159_v4 = vld [vmem:[#allocation77_spill] sm:$0xff] }
  0xfb   : > { %v1264_v37 = vadd.f32 %v1263_v20, %v1222_v58  ;;  %v1295_v25 = vadd.f32 %v1294_v12, %v1223_v21  ;;  %v561_v38 = vpop.permute.xlu1 %560  ;;  %v556_v54 = vpop.permute.xlu0 %555  ;;  %v1227_v53 = vmul.f32 %v3153_v13, %v907_v42  ;;  %v908_v11 = vmul.f32 %v3154_v44, %v636_v18  ;;  %v3160_v12 = vld [vmem:[#allocation89_spill] sm:$0xff] }
  0xfc   : > { %v642_v7 = vmul.f32 %v2595_v55, %v561_v38  ;;  %v643_v3 = vmul.f32 %v2608_v22, %v561_v38  ;;  %v909_v0 = vmul.f32 %v3155_v27, %v637_v14  ;;  %v1230_v24 = vmul.f32 %v2666_v33, %v910_v60  ;;  %v3162_v50 = vld [vmem:[#allocation81_spill] sm:$0xff]  ;;  %v3163_v60 = vld [vmem:[#allocation82_spill] sm:$0xff] }
  0xfd   : > { %v1265_v29 = vadd.f32 %v1264_v37, %v1224_v5  ;;  %v1296_v10 = vadd.f32 %v1295_v25, %v1225_v62  ;;  %v1231_v51 = vmul.f32 %v2668_v17, %v911_v28  ;;  %v640_v63 = vmul.f32 %v2595_v55, %v556_v54  ;;  %v3164_v28 = vld [vmem:[#allocation83_spill] sm:$0xff]  ;;  %v3165_v37 = vld [vmem:[#allocation84_spill] sm:$0xff] }
  0xfe   : > { %v641_v9 = vmul.f32 %v2608_v22, %v556_v54  ;;  %v1228_v6 = vmul.f32 %v2670_v59, %v908_v11  ;;  %v1229_v56 = vmul.f32 %v2672_v31, %v909_v0  ;;  %v914_v2 = vmul.f32 %v3156_v30, %v642_v7 }
  0xff   : > { %v1266_v15 = vadd.f32 %v1265_v29, %v1226_v23  ;;  %v1297_v39 = vadd.f32 %v1296_v10, %v1227_v53  ;;  %v571_v16 = vpop.permute.xlu1 %570  ;;  %v566_v1 = vpop.permute.xlu0 %565  ;;  %v915_v42 = vmul.f32 %v3157_v41, %v643_v3  ;;  %v912_v33 = vmul.f32 %v3158_v57, %v640_v63 }
 0x100   : > { %v913_v17 = vmul.f32 %v3159_v4, %v641_v9  ;;  %v646_v35 = vmul.f32 %v2595_v55, %v571_v16  ;;  %v647_v47 = vmul.f32 %v2608_v22, %v571_v16  ;;  %v1169_v59 = vmul.f32 0.6931472, %v2714_v34 }
 0x101   : > { %v1267_v43 = vadd.f32 %v1266_v15, %v1228_v6  ;;  %v1298_v61 = vadd.f32 %v1297_v39, %v1229_v56  ;;  %v1171_v31 = vmul.f32 0.6931472, %v2718_v19  ;;  %v644_v36 = vmul.f32 %v2595_v55, %v566_v1 }
 0x102   : > { %v645_v49 = vmul.f32 %v2608_v22, %v566_v1  ;;  %v1232_v21 = vmul.f32 %v2686_v46, %v912_v33  ;;  %v1233_v20 = vmul.f32 %v2688_v26, %v913_v17  ;;  %v1234_v5 = vmul.f32 %v3160_v12, %v914_v2 }
 0x103   : > { %v1268_v58 = vadd.f32 %v1267_v43, %v1230_v24  ;;  %v1299_v8 = vadd.f32 %v1298_v61, %v1231_v51  ;;  %v1235_v62 = vmul.f32 %v3161_v48, %v915_v42  ;;  %v916_v34 = vmul.f32 %v3162_v50, %v644_v36 }
 0x104   : > { %v917_v19 = vmul.f32 %v3163_v60, %v645_v49  ;;  %v918_v22 = vmul.f32 %v3164_v28, %v646_v35  ;;  %v919_v25 = vmul.f32 %v3165_v37, %v647_v47 }
 0x105   : > { %v1269_v40 = vadd.f32 %v1268_v58, %v1232_v21  ;;  %v1300_v55 = vadd.f32 %v1299_v8, %v1233_v20  ;;  %v1236_v26 = vmul.f32 %v1169_v59, %v916_v34 }
 0x106   : > { %v1237_v14 = vmul.f32 %v1171_v31, %v917_v19  ;;  %v1238_v38 = vmul.f32 %v2704_v52, %v918_v22  ;;  %v1239_v54 = vmul.f32 %v2706_v45, %v919_v25 }
 0x107   : > { %v1270_v18 = vadd.f32 %v1269_v40, %v1234_v5  ;;  %v1301_v46 = vadd.f32 %v1300_v55, %v1235_v62 }
 0x109   : > { %v1271_v32 = vadd.f32 %v1270_v18, %v1236_v26  ;;  %v1302_v23 = vadd.f32 %v1301_v46, %v1237_v14 }
 0x10b   : > { %v1272_v13 = vadd.f32 %v1271_v32, %v1238_v38  ;;  %v1303_v53 = vadd.f32 %v1302_v23, %v1239_v54 }
 0x10d   : > { %1381 = vst [vmem:[%s2618_s26] sm:$0xff] %v1272_v13  ;;  %1382 = vst [vmem:[%s2618_s26 + $0x8] sm:$0xff] %v1303_v53 }
 0x10e   : > { %1816 = shalt.err (!%p1813_p4)
}
 0x10f   : > { %s1817_s9 = scalar_lea.hbm %s2883_s6, 512  ;;  %s1821_s24 = scalar_lea.hbm %s2940_s4, 1024 }
 0x110   : > { %p1818_p7 = scmp.ne.s32.totalorder %s2883_s6, %s1817_s9  ;;  %p1822_p1 = scmp.lt.u32.totalorder %s2883_s6, %s2940_s4 }
 0x111   : > { %p1823_p3 = scmp.lt.u32.totalorder %s1821_s24, %s1817_s9  ;;  %p1825_p8 = scmp.lt.u32.totalorder %s1817_s9, %s2883_s6 }
 0x112   : > { %p1819_p10 = pnand %p1818_p7, %p3166_p11 }
 0x113   : > { %p1824_p9 = por %p1823_p3, %p1822_p1 }
 0x114   : > { %p1820_p12 = pneg %p1819_p10 }
 0x115   : > { %p1826_p0 = por %p1825_p8, %p1824_p9 }
 0x117   : > { %p1827_p6 = pnand %p1826_p0, %p1820_p12 }
 0x119   : > { %1830 = shalt.err (!%p1827_p6)
}
 0x11a   : > { %s1892_s10 = smov 256   ;;  %s1893_s13 = smov 16  }
 0x11b   : > { %1578 = dma.vmem_to_hbm [thread:$0]  (%p3166_p11), %s2885_s12, 512, %s2883_s6, %s1388_s18, %s1892_s10, %s1892_s10, %s1893_s13  }
 0x11c PF: > { %s1418_s14 = sand.u32 1, %s1865_s15   ;;  %p3167_p13 = scmp.ne.s32.totalorder %s2999_s30, 0 }
 0x11d   : > { %p3168_p2 = scmp.ge.s32.totalorder %s1885_s20, 2  ;;  %s1419_s27 = scalar_lea.sflag [#allocation6], %s1418_s14 }
 0x11f   : > { %p1585_p5 = pnand %p3168_p2, %p3167_p13 }
 0x121   : > { %1860 = dma.done.wait (!%p1585_p5), %s1419_s27, 512  }
 0x122   : > { %1862 = vsyncadd (!%p1585_p5), %s1419_s27, 4294966784  ;;  %s20_s20 = sadd.s32 1, %s1885_s20   ;;  %s3169_s15 = smov %s1869_s16 }
 0x123   : > { %p17_p4 = scmp.ge.s32.totalorder %s20_s20, 4   ;;  %s3170_s16 = smov %s1873_s17 }
 0x124   : > { %s3171_s17 = smov %s1975_s29  ;;  %s3172_s18 = smov %s1881_s19 }
 0x125   : > { %s3173_s19 = smov %s3175_s23  ;;  %19 = sbr.rel (!%p17_p4) target bundleno = 6 (0x6), region = 98 }
 0x12c   :  { %1424 = vsyncpa [#allocation5], 1 }
 0x12d   :  { %1426 = vsyncpa [#allocation5 + $0x1], 1 }
 0x12e   :  { %1427 = vsyncpa [#allocation6], 1 }
 0x12f   :  { %1429 = vsyncpa [#allocation6 + $0x1], 1 }

</bundles_post_ra>
